<compile_context>
chip_gen: v7x
topology: tpu7x:2x2x1
jax: 0.10.0
libtpu: 0.0.40
codegen_flags: <defaults>
</compile_context>

<pallas_src>
import math
from functools import partial

import jax
import jax.numpy as jnp
from jax.experimental import pallas as pl
from jax.experimental.pallas import tpu as pltpu

LN_EPS = 1e-5
IGNORE = -1e5                      # same fill value as the PyTorch module
_VMEM_LIMIT = 48 * 1024 * 1024     # explicit scoped-VMEM budget; < v7x 64 MiB physical


def _gelu_new(x):
    # GPT-2 "new" gelu, restructured: 0.5*x*(1 + tanh(c*x*(1 + 0.044715*x^2)))
    c = math.sqrt(2.0 / math.pi)
    return 0.5 * x * (1.0 + jnp.tanh(c * x * (1.0 + 0.044715 * x * x)))


def _layernorm_f32(x, w, b):
    mean = jnp.mean(x, axis=-1, keepdims=True)
    var = jnp.mean((x - mean) ** 2, axis=-1, keepdims=True)
    return (x - mean) * jax.lax.rsqrt(var + LN_EPS) * w + b


# --------------------------------------------------------------------------
# Kernel 1: LN1 + causal multi-head attention + residual.
# Grid = (batch [parallel], posn // tq [arbitrary]).
# x_ref is the full (posn, d_model) slice of one batch element (batch squeezed);
# the fused QKV projection (scale pre-folded into Q) is computed once per batch
# element at qi == 0 and kept in VMEM scratch across the query-tile sweep.
# W_QKV is (d_model, 3*hd) bf16, W_O is (hd, d_model) bf16.
# --------------------------------------------------------------------------
def _ln_attn_kernel(x_ref, ln_w_ref, ln_b_ref, w_qkv_ref, b_qkv_ref,
                    wo_ref, bo_ref, o_ref, qkv_scr, *, n_heads, d_head, tq):
    qi = pl.program_id(1)
    posn = x_ref.shape[0]
    hd = n_heads * d_head

    @pl.when(qi == 0)
    def _compute_qkv():
        x = x_ref[...].astype(jnp.float32)                          # (posn, d_model)
        xn = _layernorm_f32(x, ln_w_ref[...], ln_b_ref[...]).astype(jnp.bfloat16)
        qkv = jnp.dot(xn, w_qkv_ref[...],
                      preferred_element_type=jnp.float32) + b_qkv_ref[...]
        qkv_scr[...] = qkv.astype(qkv_scr.dtype)                    # bf16 (posn, 3*hd)

    q_start = pl.multiple_of(qi * tq, tq)
    q_all = qkv_scr[pl.ds(q_start, tq), pl.ds(0, hd)]               # (tq, hd)   scaled Q
    k_all = qkv_scr[pl.ds(0, posn), pl.ds(hd, hd)]                  # (posn, hd)
    v_all = qkv_scr[pl.ds(0, posn), pl.ds(2 * hd, hd)]              # (posn, hd)

    # Additive causal mask for this query tile, shared by all heads.
    q_pos = q_start + jax.lax.broadcasted_iota(jnp.int32, (tq, posn), 0)
    k_pos = jax.lax.broadcasted_iota(jnp.int32, (tq, posn), 1)
    mask_add = jnp.where(k_pos <= q_pos, 0.0, IGNORE).astype(jnp.float32)

    zs = []
    for h in range(n_heads):                                        # static unroll
        sl = slice(h * d_head, (h + 1) * d_head)
        # scores = q_h @ k_h^T   (scale already folded into Q)
        s = jax.lax.dot_general(q_all[:, sl], k_all[:, sl],
                                (((1,), (1,)), ((), ())),
                                preferred_element_type=jnp.float32)
        s = s + mask_add
        s_max = jnp.max(s, axis=-1, keepdims=True)
        p = jnp.exp(s - s_max)
        p = p * pl.reciprocal(jnp.sum(p, axis=-1, keepdims=True), approx=True)
        zs.append(jnp.dot(p.astype(jnp.bfloat16), v_all[:, sl],
                          preferred_element_type=jnp.float32))

    # Single output projection with K = hd (instead of n_heads matmuls with K = d_head).
    z_all = jnp.concatenate(zs, axis=-1).astype(jnp.bfloat16)       # (tq, hd)
    attn = jnp.dot(z_all, wo_ref[...],
                   preferred_element_type=jnp.float32) + bo_ref[...]
    x_q = x_ref[pl.ds(q_start, tq), :].astype(jnp.float32)
    o_ref[...] = (x_q + attn).astype(o_ref.dtype)


# --------------------------------------------------------------------------
# Kernel 2a (fast path): LN2 + MLP + residual with RESIDENT weights.
# Grid = (rows // tm [parallel]).  W_in / W_out use constant index_maps so they
# are DMA'd once and re-used for every row tile; no accumulator scratch.
# --------------------------------------------------------------------------
def _ln_mlp_kernel_resident(x_ref, ln_w_ref, ln_b_ref, w_in_ref, b_in_ref,
                            w_out_ref, b_out_ref, o_ref):
    x = x_ref[...].astype(jnp.float32)
    xn = _layernorm_f32(x, ln_w_ref[...], ln_b_ref[...]).astype(jnp.bfloat16)
    pre = jnp.dot(xn, w_in_ref[...],
                  preferred_element_type=jnp.float32) + b_in_ref[...]
    # TODO(synk): gelu could be evaluated in bf16 on v6e/v7x (bf16 VPU/EUP); kept f32 for v5e.
    post = _gelu_new(pre).astype(jnp.bfloat16)
    mlp = jnp.dot(post, w_out_ref[...],
                  preferred_element_type=jnp.float32) + b_out_ref[...]
    o_ref[...] = (x + mlp).astype(o_ref.dtype)


# --------------------------------------------------------------------------
# Kernel 2b (fallback for very large d_model*d_mlp): d_mlp reduction grid axis
# with an f32 VMEM accumulator and pl.when init/finalize.
# Grid = (rows // tm [parallel], d_mlp // tk [arbitrary, last]).
# --------------------------------------------------------------------------
def _ln_mlp_kernel_reduce(x_ref, ln_w_ref, ln_b_ref, w_in_ref, b_in_ref,
                          w_out_ref, b_out_ref, o_ref, xn_ref, acc_ref):
    k = pl.program_id(1)

    @pl.when(k == 0)
    def _init():
        xn = _layernorm_f32(x_ref[...].astype(jnp.float32),
                            ln_w_ref[...], ln_b_ref[...])
        xn_ref[...] = xn.astype(xn_ref.dtype)
        acc_ref[...] = jnp.zeros_like(acc_ref)

    pre = jnp.dot(xn_ref[...], w_in_ref[...],
                  preferred_element_type=jnp.float32) + b_in_ref[...]
    post = _gelu_new(pre).astype(jnp.bfloat16)
    acc_ref[...] += jnp.dot(post, w_out_ref[...], preferred_element_type=jnp.float32)

    @pl.when(k == pl.num_programs(1) - 1)
    def _finalize():
        o_ref[...] = (x_ref[...] + acc_ref[...] + b_out_ref[...]).astype(o_ref.dtype)


# --------------------------------------------------------------------------
# Wrapper
# --------------------------------------------------------------------------
def transformer_block_forward(resid_pre, params, *, tq=256, tm=256, tk=512):
    """resid_pre: [batch, posn, d_model] f32 -> [batch, posn, d_model]."""
    batch, posn, d_model = resid_pre.shape
    n_heads, _, d_head = params["W_Q"].shape
    hd = n_heads * d_head
    d_mlp = params["W_in"].shape[1]
    f32, bf16 = jnp.float32, jnp.bfloat16

    # ---- weight prep: lane-dense 2-D, bf16 matmul operands, f32 biases/LN ----
    scale = 1.0 / math.sqrt(d_head)         # folded into Q so no per-score multiply

    def qkv2d(w):  # (n_heads, d_model, d_head) -> (d_model, n_heads*d_head)
        return jnp.transpose(w, (1, 0, 2)).reshape(d_model, hd)

    w_qkv = jnp.concatenate(
        [qkv2d(params["W_Q"]) * scale, qkv2d(params["W_K"]), qkv2d(params["W_V"])],
        axis=1).astype(bf16)                                         # (d_model, 3*hd)
    b_qkv = jnp.concatenate(
        [params["b_Q"].reshape(1, hd) * scale,
         params["b_K"].reshape(1, hd),
         params["b_V"].reshape(1, hd)], axis=1).astype(f32)          # (1, 3*hd)
    wo2 = params["W_O"].reshape(hd, d_model).astype(bf16)
    bo2 = params["b_O"].reshape(1, d_model).astype(f32)
    ln1w = params["ln1_w"].reshape(1, d_model).astype(f32)
    ln1b = params["ln1_b"].reshape(1, d_model).astype(f32)
    ln2w = params["ln2_w"].reshape(1, d_model).astype(f32)
    ln2b = params["ln2_b"].reshape(1, d_model).astype(f32)
    w_in = params["W_in"].astype(bf16)
    w_out = params["W_out"].astype(bf16)
    b_in2 = params["b_in"].reshape(1, d_mlp).astype(f32)
    b_out2 = params["b_out"].reshape(1, d_model).astype(f32)

    # ---- sublayer 1: resid_mid = attn(ln1(resid_pre)) + resid_pre ----
    tq = min(tq, posn)
    assert posn % tq == 0 and (tq % 8 == 0 or tq == posn), \
        "query tile must divide posn and be a multiple of 8"
    const = lambda b, q: (0, 0)

    resid_mid = pl.pallas_call(
        partial(_ln_attn_kernel, n_heads=n_heads, d_head=d_head, tq=tq),
        out_shape=jax.ShapeDtypeStruct((batch, posn, d_model), resid_pre.dtype),
        grid=(batch, posn // tq),
        in_specs=[
            pl.BlockSpec((None, posn, d_model), lambda b, q: (b, 0, 0)),  # full seq (revisit-cached)
            pl.BlockSpec((1, d_model), const),        # ln1 w
            pl.BlockSpec((1, d_model), const),        # ln1 b
            pl.BlockSpec((d_model, 3 * hd), const),   # fused W_QKV (Q pre-scaled)
            pl.BlockSpec((1, 3 * hd), const),         # fused b_QKV
            pl.BlockSpec((hd, d_model), const),       # W_O
            pl.BlockSpec((1, d_model), const),        # b_O
        ],
        out_specs=pl.BlockSpec((None, tq, d_model), lambda b, q: (b, q, 0)),
        scratch_shapes=[pltpu.VMEM((posn, 3 * hd), jnp.bfloat16)],   # QKV, persists over q tiles
        compiler_params=pltpu.CompilerParams(
            dimension_semantics=("parallel", "arbitrary"),
            vmem_limit_bytes=_VMEM_LIMIT,
        ),
    )(resid_pre, ln1w, ln1b, w_qkv, b_qkv, wo2, bo2)

    # ---- sublayer 2: resid_post = mlp(ln2(resid_mid)) + resid_mid ----
    M = batch * posn
    tm = min(tm, M)
    assert M % tm == 0 and (tm % 8 == 0 or tm == M), \
        "row tile must divide rows and be a multiple of 8"
    x2 = resid_mid.reshape(M, d_model)

    # Resident-weight path when the double-buffered bf16 W_in+W_out slabs fit VMEM
    # comfortably (true for GPT-2-sized layers); otherwise reduce over d_mlp tiles.
    resident_bytes = 2 * (2 * d_model * d_mlp * 2)    # 2 pipeline buffers x both weights x bf16
    use_resident = resident_bytes <= 28 * 1024 * 1024

    if use_resident:
        resid_post = pl.pallas_call(
            _ln_mlp_kernel_resident,
            out_shape=jax.ShapeDtypeStruct((M, d_model), resid_pre.dtype),
            grid=(M // tm,),
            in_specs=[
                pl.BlockSpec((tm, d_model), lambda i: (i, 0)),     # resid_mid rows
                pl.BlockSpec((1, d_model), lambda i: (0, 0)),      # ln2 w
                pl.BlockSpec((1, d_model), lambda i: (0, 0)),      # ln2 b
                pl.BlockSpec((d_model, d_mlp), lambda i: (0, 0)),  # W_in (resident)
                pl.BlockSpec((1, d_mlp), lambda i: (0, 0)),        # b_in
                pl.BlockSpec((d_mlp, d_model), lambda i: (0, 0)),  # W_out (resident)
                pl.BlockSpec((1, d_model), lambda i: (0, 0)),      # b_out
            ],
            out_specs=pl.BlockSpec((tm, d_model), lambda i: (i, 0)),
            compiler_params=pltpu.CompilerParams(
                dimension_semantics=("parallel",),
                vmem_limit_bytes=_VMEM_LIMIT,
            ),
        )(x2, ln2w, ln2b, w_in, b_in2, w_out, b_out2)
    else:
        tk = min(tk, d_mlp)
        assert d_mlp % tk == 0 and tk % 128 == 0, \
            "d_mlp tile must divide d_mlp and be a multiple of 128"
        resid_post = pl.pallas_call(
            _ln_mlp_kernel_reduce,
            out_shape=jax.ShapeDtypeStruct((M, d_model), resid_pre.dtype),
            grid=(M // tm, d_mlp // tk),
            in_specs=[
                pl.BlockSpec((tm, d_model), lambda i, k: (i, 0)),
                pl.BlockSpec((1, d_model), lambda i, k: (0, 0)),
                pl.BlockSpec((1, d_model), lambda i, k: (0, 0)),
                pl.BlockSpec((d_model, tk), lambda i, k: (0, k)),
                pl.BlockSpec((1, tk), lambda i, k: (0, k)),
                pl.BlockSpec((tk, d_model), lambda i, k: (k, 0)),
                pl.BlockSpec((1, d_model), lambda i, k: (0, 0)),
            ],
            out_specs=pl.BlockSpec((tm, d_model), lambda i, k: (i, 0)),
            scratch_shapes=[
                pltpu.VMEM((tm, d_model), jnp.bfloat16),   # LN2 output (once per row tile)
                pltpu.VMEM((tm, d_model), jnp.float32),    # f32 accumulator over d_mlp tiles
            ],
            compiler_params=pltpu.CompilerParams(
                dimension_semantics=("parallel", "arbitrary"),
                vmem_limit_bytes=_VMEM_LIMIT,
            ),
        )(x2, ln2w, ln2b, w_in, b_in2, w_out, b_out2)

    return resid_post.reshape(batch, posn, d_model)


if __name__ == "__main__":
    # Small shapes consistent with the module: (batch, posn, d_model) activations.
    batch, posn = 2, 64
    d_model, n_heads, d_head, d_mlp = 128, 4, 32, 512
    init_range = 0.02

    ks = jax.random.split(jax.random.PRNGKey(0), 17)
    x = jax.random.normal(ks[0], (batch, posn, d_model), dtype=jnp.float32)
    params = dict(
        ln1_w=1.0 + 0.1 * jax.random.normal(ks[1], (d_model,), jnp.float32),
        ln1_b=0.1 * jax.random.normal(ks[2], (d_model,), jnp.float32),
        W_Q=init_range * jax.random.normal(ks[3], (n_heads, d_model, d_head), jnp.float32),
        W_K=init_range * jax.random.normal(ks[4], (n_heads, d_model, d_head), jnp.float32),
        W_V=init_range * jax.random.normal(ks[5], (n_heads, d_model, d_head), jnp.float32),
        W_O=init_range * jax.random.normal(ks[6], (n_heads, d_head, d_model), jnp.float32),
        b_Q=0.01 * jax.random.normal(ks[7], (n_heads, d_head), jnp.float32),
        b_K=0.01 * jax.random.normal(ks[8], (n_heads, d_head), jnp.float32),
        b_V=0.01 * jax.random.normal(ks[9], (n_heads, d_head), jnp.float32),
        b_O=0.01 * jax.random.normal(ks[10], (d_model,), jnp.float32),
        ln2_w=1.0 + 0.1 * jax.random.normal(ks[11], (d_model,), jnp.float32),
        ln2_b=0.1 * jax.random.normal(ks[12], (d_model,), jnp.float32),
        W_in=init_range * jax.random.normal(ks[13], (d_model, d_mlp), jnp.float32),
        W_out=init_range * jax.random.normal(ks[14], (d_mlp, d_model), jnp.float32),
        b_in=0.01 * jax.random.normal(ks[15], (d_mlp,), jnp.float32),
        b_out=0.01 * jax.random.normal(ks[16], (d_model,), jnp.float32),
    )

    out = jax.block_until_ready(transformer_block_forward(x, params, tq=64, tm=128))

    # Pure-JAX f32 reference of the TransformerBlock forward pass.
    def reference(x, p):
        def ln(y, w, b):
            mu = y.mean(-1, keepdims=True)
            var = ((y - mu) ** 2).mean(-1, keepdims=True)
            return (y - mu) / jnp.sqrt(var + LN_EPS) * w + b

        xn = ln(x, p["ln1_w"], p["ln1_b"])
        q = jnp.einsum("bpd,hdk->bphk", xn, p["W_Q"]) + p["b_Q"]
        k = jnp.einsum("bpd,hdk->bphk", xn, p["W_K"]) + p["b_K"]
        v = jnp.einsum("bpd,hdk->bphk", xn, p["W_V"]) + p["b_V"]
        scores = jnp.einsum("bqhk,bshk->bhqs", q, k) / math.sqrt(d_head)
        qpos = jnp.arange(posn)[:, None]
        spos = jnp.arange(posn)[None, :]
        scores = jnp.where(spos <= qpos, scores, IGNORE)
        probs = jax.nn.softmax(scores, axis=-1)
        z = jnp.einsum("bhqs,bshk->bqhk", probs, v)
        attn_out = jnp.einsum("bqhk,hkd->bqd", z, p["W_O"]) + p["b_O"]
        resid_mid = x + attn_out

        xn2 = ln(resid_mid, p["ln2_w"], p["ln2_b"])
        pre = jnp.einsum("bpd,dm->bpm", xn2, p["W_in"]) + p["b_in"]
        post = _gelu_new(pre)
        mlp_out = jnp.einsum("bpm,md->bpd", post, p["W_out"]) + p["b_out"]
        return resid_mid + mlp_out

    ref = reference(x, params)
    assert out.shape == ref.shape
    max_err = float(jnp.max(jnp.abs(out - ref)))
    # tolerance loosened for bf16 matmul operands (accumulation is f32)
    assert jnp.allclose(out, ref, atol=2e-2, rtol=2e-2), f"max abs err = {max_err}"
    print("KERNEL_OK")
</pallas_src>

<mosaic_0001>
module attributes {stable_mosaic.version = 11 : i64} {
  func.func @_ln_attn_kernel(%arg0: i32, %arg1: i32, %arg2: memref<1x64x128xf32, #tpu.memory_space<vmem>>, %arg3: memref<1x128xf32, #tpu.memory_space<vmem>>, %arg4: memref<1x128xf32, #tpu.memory_space<vmem>>, %arg5: memref<128x384xbf16, #tpu.memory_space<vmem>>, %arg6: memref<1x384xf32, #tpu.memory_space<vmem>>, %arg7: memref<128x128xbf16, #tpu.memory_space<vmem>>, %arg8: memref<1x128xf32, #tpu.memory_space<vmem>>, %arg9: memref<1x64x128xf32, #tpu.memory_space<vmem>>, %arg10: memref<64x384xbf16, #tpu.memory_space<vmem>>) attributes {dimension_semantics = [#tpu.dimension_semantics<parallel>, #tpu.dimension_semantics<arbitrary>], iteration_bounds = array<i64: 2, 1>, scalar_prefetch = 0 : i64, scratch_operands = 1 : i64, tpu.core_type = #tpu.core_type<tc>, window_params = [{transform_indices = @transform_0, window_bounds = array<i64: 1, 64, 128>}, {pipeline_mode = #tpu.pipeline_mode<synchronous>, transform_indices = @transform_1, window_bounds = array<i64: 1, 128>}, {pipeline_mode = #tpu.pipeline_mode<synchronous>, transform_indices = @transform_2, window_bounds = array<i64: 1, 128>}, {pipeline_mode = #tpu.pipeline_mode<synchronous>, transform_indices = @transform_3, window_bounds = array<i64: 128, 384>}, {pipeline_mode = #tpu.pipeline_mode<synchronous>, transform_indices = @transform_4, window_bounds = array<i64: 1, 384>}, {pipeline_mode = #tpu.pipeline_mode<synchronous>, transform_indices = @transform_5, window_bounds = array<i64: 128, 128>}, {pipeline_mode = #tpu.pipeline_mode<synchronous>, transform_indices = @transform_6, window_bounds = array<i64: 1, 128>}, {transform_indices = @transform_7, window_bounds = array<i64: 1, 64, 128>}]} {
    %c0_i32 = arith.constant 0 : i32
    %0 = arith.cmpi eq, %arg1, %c0_i32 : i32
    %1 = arith.extui %0 : i1 to i32
    %c0_i32_0 = arith.constant 0 : i32
    %2 = arith.cmpi ne, %1, %c0_i32_0 : i32
    scf.if %2 {
      %c0_30 = arith.constant 0 : index
      %c0_31 = arith.constant 0 : index
      %c0_32 = arith.constant 0 : index
      %99 = vector.load %arg2[%c0_30, %c0_31, %c0_32] : memref<1x64x128xf32, #tpu.memory_space<vmem>>, vector<1x64x128xf32>
      %100 = vector.shape_cast %99 : vector<1x64x128xf32> to vector<64x128xf32>
      %c0_33 = arith.constant 0 : index
      %c0_34 = arith.constant 0 : index
      %101 = vector.load %arg3[%c0_33, %c0_34] : memref<1x128xf32, #tpu.memory_space<vmem>>, vector<1x128xf32>
      %c0_35 = arith.constant 0 : index
      %c0_36 = arith.constant 0 : index
      %102 = vector.load %arg4[%c0_35, %c0_36] : memref<1x128xf32, #tpu.memory_space<vmem>>, vector<1x128xf32>
      %cst_37 = arith.constant dense<0.000000e+00> : vector<64xf32>
      %103 = vector.multi_reduction <add>, %100, %cst_37 [1] : vector<64x128xf32> to vector<64xf32>
      %104 = vector.shape_cast %103 : vector<64xf32> to vector<64x1xf32>
      %cst_38 = arith.constant 1.280000e+02 : f32
      %105 = vector.broadcast %cst_38 : f32 to vector<64x1xf32>
      %106 = arith.divf %104, %105 : vector<64x1xf32>
      %107 = vector.broadcast %106 : vector<64x1xf32> to vector<64x128xf32>
      %108 = arith.subf %100, %107 : vector<64x128xf32>
      %109 = arith.mulf %108, %108 : vector<64x128xf32>
      %cst_39 = arith.constant dense<0.000000e+00> : vector<64xf32>
      %110 = vector.multi_reduction <add>, %109, %cst_39 [1] : vector<64x128xf32> to vector<64xf32>
      %111 = vector.shape_cast %110 : vector<64xf32> to vector<64x1xf32>
      %cst_40 = arith.constant 1.280000e+02 : f32
      %112 = vector.broadcast %cst_40 : f32 to vector<64x1xf32>
      %113 = arith.divf %111, %112 : vector<64x1xf32>
      %114 = vector.broadcast %106 : vector<64x1xf32> to vector<64x128xf32>
      %115 = arith.subf %100, %114 : vector<64x128xf32>
      %cst_41 = arith.constant 9.99999974E-6 : f32
      %116 = vector.broadcast %cst_41 : f32 to vector<64x1xf32>
      %117 = arith.addf %113, %116 : vector<64x1xf32>
      %118 = math.rsqrt %117 : vector<64x1xf32>
      %119 = vector.broadcast %118 : vector<64x1xf32> to vector<64x128xf32>
      %120 = arith.mulf %115, %119 : vector<64x128xf32>
      %121 = vector.broadcast %101 : vector<1x128xf32> to vector<64x128xf32>
      %122 = arith.mulf %120, %121 : vector<64x128xf32>
      %123 = vector.broadcast %102 : vector<1x128xf32> to vector<64x128xf32>
      %124 = arith.addf %122, %123 : vector<64x128xf32>
      %125 = arith.truncf %124 : vector<64x128xf32> to vector<64x128xbf16>
      %c0_42 = arith.constant 0 : index
      %c0_43 = arith.constant 0 : index
      %126 = vector.load %arg5[%c0_42, %c0_43] : memref<128x384xbf16, #tpu.memory_space<vmem>>, vector<128x384xbf16>
      %cst_44 = arith.constant dense<0.000000e+00> : vector<64x384xf32>
      %127 = tpu.matmul %125, %126, %cst_44 {dimension_numbers = #tpu.dot_dimension_numbers<[1], [0], [0], [1], [0, 0, 1, 1], [], []>} : vector<64x128xbf16>, vector<128x384xbf16>, vector<64x384xf32> -> vector<64x384xf32>
      %c0_45 = arith.constant 0 : index
      %c0_46 = arith.constant 0 : index
      %128 = vector.load %arg6[%c0_45, %c0_46] : memref<1x384xf32, #tpu.memory_space<vmem>>, vector<1x384xf32>
      %129 = vector.broadcast %128 : vector<1x384xf32> to vector<64x384xf32>
      %130 = arith.addf %127, %129 : vector<64x384xf32>
      %131 = arith.truncf %130 : vector<64x384xf32> to vector<64x384xbf16>
      %c0_47 = arith.constant 0 : index
      %c0_48 = arith.constant 0 : index
      %132 = vector.load %arg10[%c0_47, %c0_48] : memref<64x384xbf16, #tpu.memory_space<vmem>>, vector<64x384xbf16>
      tpu.vector_store %arg10[%c0_47, %c0_48], %131 {strides = array<i32>} : memref<64x384xbf16, #tpu.memory_space<vmem>>, vector<64x384xbf16>,
    } else {
    }
    %c64_i32 = arith.constant 64 : i32
    %3 = arith.muli %arg1, %c64_i32 : i32
    %4 = tpu.assume_multiple %3, 64 : i32
    %5 = arith.index_cast %4 : i32 to index
    %c0 = arith.constant 0 : index
    %6 = vector.load %arg10[%5, %c0] : memref<64x384xbf16, #tpu.memory_space<vmem>>, vector<64x128xbf16>
    %c0_1 = arith.constant 0 : index
    %c128 = arith.constant 128 : index
    %7 = vector.load %arg10[%c0_1, %c128] : memref<64x384xbf16, #tpu.memory_space<vmem>>, vector<64x128xbf16>
    %c0_2 = arith.constant 0 : index
    %c256 = arith.constant 256 : index
    %8 = vector.load %arg10[%c0_2, %c256] : memref<64x384xbf16, #tpu.memory_space<vmem>>, vector<64x128xbf16>
    %9 = tpu.iota {dimensions = array<i32: 0>} : vector<64x64xi32>
    %10 = vector.broadcast %4 : i32 to vector<64x64xi32>
    %11 = arith.addi %10, %9 : vector<64x64xi32>
    %12 = tpu.iota {dimensions = array<i32: 1>} : vector<64x64xi32>
    %13 = arith.cmpi sle, %12, %11 : vector<64x64xi32>
    %cst = arith.constant 0.000000e+00 : f32
    %cst_3 = arith.constant -1.000000e+05 : f32
    %14 = vector.broadcast %cst : f32 to vector<64x64xf32>
    %15 = vector.broadcast %cst_3 : f32 to vector<64x64xf32>
    %16 = arith.select %13, %14, %15 : vector<64x64xi1>, vector<64x64xf32>
    %17 = vector.extract_strided_slice %6 {offsets = [0, 0], sizes = [64, 32], strides = [1, 1]} : vector<64x128xbf16> to vector<64x32xbf16>
    %18 = vector.extract_strided_slice %7 {offsets = [0, 0], sizes = [64, 32], strides = [1, 1]} : vector<64x128xbf16> to vector<64x32xbf16>
    %cst_4 = arith.constant dense<0.000000e+00> : vector<64x64xf32>
    %19 = tpu.matmul %17, %18, %cst_4 {dimension_numbers = #tpu.dot_dimension_numbers<[1], [1], [0], [0], [0, 0, 1, 0], [], []>} : vector<64x32xbf16>, vector<64x32xbf16>, vector<64x64xf32> -> vector<64x64xf32>
    %20 = arith.addf %19, %16 : vector<64x64xf32>
    %cst_5 = arith.constant dense<0xFF800000> : vector<64xf32>
    %21 = vector.multi_reduction <maximumf>, %20, %cst_5 [1] : vector<64x64xf32> to vector<64xf32>
    %22 = vector.shape_cast %21 : vector<64xf32> to vector<64x1xf32>
    %23 = vector.broadcast %22 : vector<64x1xf32> to vector<64x64xf32>
    %24 = arith.subf %20, %23 : vector<64x64xf32>
    %25 = math.exp %24 : vector<64x64xf32>
    %cst_6 = arith.constant dense<0.000000e+00> : vector<64xf32>
    %26 = vector.multi_reduction <add>, %25, %cst_6 [1] : vector<64x64xf32> to vector<64xf32>
    %27 = vector.shape_cast %26 : vector<64xf32> to vector<64x1xf32>
    %28 = tpu.reciprocal %27 {approx = true} : vector<64x1xf32> -> vector<64x1xf32>
    %29 = vector.broadcast %28 : vector<64x1xf32> to vector<64x64xf32>
    %30 = arith.mulf %25, %29 : vector<64x64xf32>
    %31 = arith.truncf %30 : vector<64x64xf32> to vector<64x64xbf16>
    %32 = vector.extract_strided_slice %8 {offsets = [0, 0], sizes = [64, 32], strides = [1, 1]} : vector<64x128xbf16> to vector<64x32xbf16>
    %cst_7 = arith.constant dense<0.000000e+00> : vector<64x32xf32>
    %33 = tpu.matmul %31, %32, %cst_7 {dimension_numbers = #tpu.dot_dimension_numbers<[1], [0], [0], [1], [0, 0, 1, 1], [], []>} : vector<64x64xbf16>, vector<64x32xbf16>, vector<64x32xf32> -> vector<64x32xf32>
    %34 = vector.extract_strided_slice %6 {offsets = [0, 32], sizes = [64, 32], strides = [1, 1]} : vector<64x128xbf16> to vector<64x32xbf16>
    %35 = vector.extract_strided_slice %7 {offsets = [0, 32], sizes = [64, 32], strides = [1, 1]} : vector<64x128xbf16> to vector<64x32xbf16>
    %cst_8 = arith.constant dense<0.000000e+00> : vector<64x64xf32>
    %36 = tpu.matmul %34, %35, %cst_8 {dimension_numbers = #tpu.dot_dimension_numbers<[1], [1], [0], [0], [0, 0, 1, 0], [], []>} : vector<64x32xbf16>, vector<64x32xbf16>, vector<64x64xf32> -> vector<64x64xf32>
    %37 = arith.addf %36, %16 : vector<64x64xf32>
    %cst_9 = arith.constant dense<0xFF800000> : vector<64xf32>
    %38 = vector.multi_reduction <maximumf>, %37, %cst_9 [1] : vector<64x64xf32> to vector<64xf32>
    %39 = vector.shape_cast %38 : vector<64xf32> to vector<64x1xf32>
    %40 = vector.broadcast %39 : vector<64x1xf32> to vector<64x64xf32>
    %41 = arith.subf %37, %40 : vector<64x64xf32>
    %42 = math.exp %41 : vector<64x64xf32>
    %cst_10 = arith.constant dense<0.000000e+00> : vector<64xf32>
    %43 = vector.multi_reduction <add>, %42, %cst_10 [1] : vector<64x64xf32> to vector<64xf32>
    %44 = vector.shape_cast %43 : vector<64xf32> to vector<64x1xf32>
    %45 = tpu.reciprocal %44 {approx = true} : vector<64x1xf32> -> vector<64x1xf32>
    %46 = vector.broadcast %45 : vector<64x1xf32> to vector<64x64xf32>
    %47 = arith.mulf %42, %46 : vector<64x64xf32>
    %48 = arith.truncf %47 : vector<64x64xf32> to vector<64x64xbf16>
    %49 = vector.extract_strided_slice %8 {offsets = [0, 32], sizes = [64, 32], strides = [1, 1]} : vector<64x128xbf16> to vector<64x32xbf16>
    %cst_11 = arith.constant dense<0.000000e+00> : vector<64x32xf32>
    %50 = tpu.matmul %48, %49, %cst_11 {dimension_numbers = #tpu.dot_dimension_numbers<[1], [0], [0], [1], [0, 0, 1, 1], [], []>} : vector<64x64xbf16>, vector<64x32xbf16>, vector<64x32xf32> -> vector<64x32xf32>
    %51 = vector.extract_strided_slice %6 {offsets = [0, 64], sizes = [64, 32], strides = [1, 1]} : vector<64x128xbf16> to vector<64x32xbf16>
    %52 = vector.extract_strided_slice %7 {offsets = [0, 64], sizes = [64, 32], strides = [1, 1]} : vector<64x128xbf16> to vector<64x32xbf16>
    %cst_12 = arith.constant dense<0.000000e+00> : vector<64x64xf32>
    %53 = tpu.matmul %51, %52, %cst_12 {dimension_numbers = #tpu.dot_dimension_numbers<[1], [1], [0], [0], [0, 0, 1, 0], [], []>} : vector<64x32xbf16>, vector<64x32xbf16>, vector<64x64xf32> -> vector<64x64xf32>
    %54 = arith.addf %53, %16 : vector<64x64xf32>
    %cst_13 = arith.constant dense<0xFF800000> : vector<64xf32>
    %55 = vector.multi_reduction <maximumf>, %54, %cst_13 [1] : vector<64x64xf32> to vector<64xf32>
    %56 = vector.shape_cast %55 : vector<64xf32> to vector<64x1xf32>
    %57 = vector.broadcast %56 : vector<64x1xf32> to vector<64x64xf32>
    %58 = arith.subf %54, %57 : vector<64x64xf32>
    %59 = math.exp %58 : vector<64x64xf32>
    %cst_14 = arith.constant dense<0.000000e+00> : vector<64xf32>
    %60 = vector.multi_reduction <add>, %59, %cst_14 [1] : vector<64x64xf32> to vector<64xf32>
    %61 = vector.shape_cast %60 : vector<64xf32> to vector<64x1xf32>
    %62 = tpu.reciprocal %61 {approx = true} : vector<64x1xf32> -> vector<64x1xf32>
    %63 = vector.broadcast %62 : vector<64x1xf32> to vector<64x64xf32>
    %64 = arith.mulf %59, %63 : vector<64x64xf32>
    %65 = arith.truncf %64 : vector<64x64xf32> to vector<64x64xbf16>
    %66 = vector.extract_strided_slice %8 {offsets = [0, 64], sizes = [64, 32], strides = [1, 1]} : vector<64x128xbf16> to vector<64x32xbf16>
    %cst_15 = arith.constant dense<0.000000e+00> : vector<64x32xf32>
    %67 = tpu.matmul %65, %66, %cst_15 {dimension_numbers = #tpu.dot_dimension_numbers<[1], [0], [0], [1], [0, 0, 1, 1], [], []>} : vector<64x64xbf16>, vector<64x32xbf16>, vector<64x32xf32> -> vector<64x32xf32>
    %68 = vector.extract_strided_slice %6 {offsets = [0, 96], sizes = [64, 32], strides = [1, 1]} : vector<64x128xbf16> to vector<64x32xbf16>
    %69 = vector.extract_strided_slice %7 {offsets = [0, 96], sizes = [64, 32], strides = [1, 1]} : vector<64x128xbf16> to vector<64x32xbf16>
    %cst_16 = arith.constant dense<0.000000e+00> : vector<64x64xf32>
    %70 = tpu.matmul %68, %69, %cst_16 {dimension_numbers = #tpu.dot_dimension_numbers<[1], [1], [0], [0], [0, 0, 1, 0], [], []>} : vector<64x32xbf16>, vector<64x32xbf16>, vector<64x64xf32> -> vector<64x64xf32>
    %71 = arith.addf %70, %16 : vector<64x64xf32>
    %cst_17 = arith.constant dense<0xFF800000> : vector<64xf32>
    %72 = vector.multi_reduction <maximumf>, %71, %cst_17 [1] : vector<64x64xf32> to vector<64xf32>
    %73 = vector.shape_cast %72 : vector<64xf32> to vector<64x1xf32>
    %74 = vector.broadcast %73 : vector<64x1xf32> to vector<64x64xf32>
    %75 = arith.subf %71, %74 : vector<64x64xf32>
    %76 = math.exp %75 : vector<64x64xf32>
    %cst_18 = arith.constant dense<0.000000e+00> : vector<64xf32>
    %77 = vector.multi_reduction <add>, %76, %cst_18 [1] : vector<64x64xf32> to vector<64xf32>
    %78 = vector.shape_cast %77 : vector<64xf32> to vector<64x1xf32>
    %79 = tpu.reciprocal %78 {approx = true} : vector<64x1xf32> -> vector<64x1xf32>
    %80 = vector.broadcast %79 : vector<64x1xf32> to vector<64x64xf32>
    %81 = arith.mulf %76, %80 : vector<64x64xf32>
    %82 = arith.truncf %81 : vector<64x64xf32> to vector<64x64xbf16>
    %83 = vector.extract_strided_slice %8 {offsets = [0, 96], sizes = [64, 32], strides = [1, 1]} : vector<64x128xbf16> to vector<64x32xbf16>
    %cst_19 = arith.constant dense<0.000000e+00> : vector<64x32xf32>
    %84 = tpu.matmul %82, %83, %cst_19 {dimension_numbers = #tpu.dot_dimension_numbers<[1], [0], [0], [1], [0, 0, 1, 1], [], []>} : vector<64x64xbf16>, vector<64x32xbf16>, vector<64x32xf32> -> vector<64x32xf32>
    %85 = tpu.concatenate %33, %50, %67, %84 in 1 : vector<64x32xf32>, vector<64x32xf32>, vector<64x32xf32>, vector<64x32xf32> -> vector<64x128xf32>
    %86 = arith.truncf %85 : vector<64x128xf32> to vector<64x128xbf16>
    %c0_20 = arith.constant 0 : index
    %c0_21 = arith.constant 0 : index
    %87 = vector.load %arg7[%c0_20, %c0_21] : memref<128x128xbf16, #tpu.memory_space<vmem>>, vector<128x128xbf16>
    %cst_22 = arith.constant dense<0.000000e+00> : vector<64x128xf32>
    %88 = tpu.matmul %86, %87, %cst_22 {dimension_numbers = #tpu.dot_dimension_numbers<[1], [0], [0], [1], [0, 0, 1, 1], [], []>} : vector<64x128xbf16>, vector<128x128xbf16>, vector<64x128xf32> -> vector<64x128xf32>
    %c0_23 = arith.constant 0 : index
    %c0_24 = arith.constant 0 : index
    %89 = vector.load %arg8[%c0_23, %c0_24] : memref<1x128xf32, #tpu.memory_space<vmem>>, vector<1x128xf32>
    %90 = vector.broadcast %89 : vector<1x128xf32> to vector<64x128xf32>
    %91 = arith.addf %88, %90 : vector<64x128xf32>
    %c0_25 = arith.constant 0 : index
    %92 = arith.index_cast %4 : i32 to index
    %c0_26 = arith.constant 0 : index
    %93 = vector.load %arg2[%c0_25, %92, %c0_26] : memref<1x64x128xf32, #tpu.memory_space<vmem>>, vector<1x64x128xf32>
    %94 = vector.shape_cast %93 : vector<1x64x128xf32> to vector<64x128xf32>
    %95 = arith.addf %94, %91 : vector<64x128xf32>
    %c0_27 = arith.constant 0 : index
    %c0_28 = arith.constant 0 : index
    %c0_29 = arith.constant 0 : index
    %96 = vector.load %arg9[%c0_27, %c0_28, %c0_29] : memref<1x64x128xf32, #tpu.memory_space<vmem>>, vector<1x64x128xf32>
    %97 = vector.shape_cast %96 : vector<1x64x128xf32> to vector<64x128xf32>
    %98 = vector.shape_cast %95 : vector<64x128xf32> to vector<1x64x128xf32>
    tpu.vector_store %arg9[%c0_27, %c0_28, %c0_29], %98 {strides = array<i32>} : memref<1x64x128xf32, #tpu.memory_space<vmem>>, vector<1x64x128xf32>,
    return
  }
  func.func @transform_0(%arg0: i32, %arg1: i32) -> (i32, i32, i32) {
    %c0_i32 = arith.constant 0 : i32
    %c0_i32_0 = arith.constant 0 : i32
    %c0_i32_1 = arith.constant 0 : i32
    return %arg0, %c0_i32, %c0_i32_0 : i32, i32, i32
  }
  func.func @transform_1(%arg0: i32, %arg1: i32) -> (i32, i32) {
    %c0_i32 = arith.constant 0 : i32
    %c0_i32_0 = arith.constant 0 : i32
    %c0_i32_1 = arith.constant 0 : i32
    return %c0_i32, %c0_i32_0 : i32, i32
  }
  func.func @transform_2(%arg0: i32, %arg1: i32) -> (i32, i32) {
    %c0_i32 = arith.constant 0 : i32
    %c0_i32_0 = arith.constant 0 : i32
    %c0_i32_1 = arith.constant 0 : i32
    return %c0_i32, %c0_i32_0 : i32, i32
  }
  func.func @transform_3(%arg0: i32, %arg1: i32) -> (i32, i32) {
    %c0_i32 = arith.constant 0 : i32
    %c0_i32_0 = arith.constant 0 : i32
    %c0_i32_1 = arith.constant 0 : i32
    return %c0_i32, %c0_i32_0 : i32, i32
  }
  func.func @transform_4(%arg0: i32, %arg1: i32) -> (i32, i32) {
    %c0_i32 = arith.constant 0 : i32
    %c0_i32_0 = arith.constant 0 : i32
    %c0_i32_1 = arith.constant 0 : i32
    return %c0_i32, %c0_i32_0 : i32, i32
  }
  func.func @transform_5(%arg0: i32, %arg1: i32) -> (i32, i32) {
    %c0_i32 = arith.constant 0 : i32
    %c0_i32_0 = arith.constant 0 : i32
    %c0_i32_1 = arith.constant 0 : i32
    return %c0_i32, %c0_i32_0 : i32, i32
  }
  func.func @transform_6(%arg0: i32, %arg1: i32) -> (i32, i32) {
    %c0_i32 = arith.constant 0 : i32
    %c0_i32_0 = arith.constant 0 : i32
    %c0_i32_1 = arith.constant 0 : i32
    return %c0_i32, %c0_i32_0 : i32, i32
  }
  func.func @transform_7(%arg0: i32, %arg1: i32) -> (i32, i32, i32) {
    %c0_i32 = arith.constant 0 : i32
    %c0_i32_0 = arith.constant 0 : i32
    return %arg0, %arg1, %c0_i32 : i32, i32, i32
  }
}

</mosaic_0001>

<bundles_post_ra>
// kernel: tpu_custom_call.1
= control target key start
LH: loop header
LB: loop body
LE: loop exit
PB: predicated region body
PF: predicated region fallthrough
CT: control target
= control target key end

     0   :  { %12 = vsyncpa [#allocation4], 0  ;;  %s4340_s0 = inlined_call_operand.hbm [shape: f32[2,64,128], index: 0, kind: input, shape index: {}]   ;;  %s4341_s1 = inlined_call_operand.vmem [shape: f32[1,128], index: 1, kind: input, shape index: {}]   ;;  %s4342_s2 = inlined_call_operand.vmem [shape: f32[1,128], index: 2, kind: input, shape index: {}]   ;;  %s4343_s3 = inlined_call_operand.hbm [shape: bf16[128,384], index: 3, kind: input, shape index: {}]   ;;  %s4344_s4 = inlined_call_operand.vmem [shape: f32[1,384], index: 4, kind: input, shape index: {}]   ;;  %s4345_s5 = inlined_call_operand.hbm [shape: bf16[128,128], index: 5, kind: input, shape index: {}]   ;;  %s4346_s6 = inlined_call_operand.vmem [shape: f32[1,128], index: 6, kind: input, shape index: {}]   ;;  %s4347_s7 = inlined_call_operand.hbm [shape: f32[2,64,128], index: 7, kind: output, shape index: {}]  }
   0x1   :  { %14 = vsyncpa [#allocation4 + $0x1], 0 }
   0x2   :  { %15 = vsyncpa [#allocation7], 0 }
   0x3   :  { %16 = vsyncpa [#allocation5], 0 }
   0x4   :  { %18 = vsyncpa [#allocation5 + $0x1], 0  ;;  %s3348_s24 = smov 0   ;;  %s3350_s25 = smov 0  }
   0x5   :  { %s3352_s26 = smov 0   ;;  %s3354_s27 = smov 0  }
   0x6   :  { %s3356_s28 = smov 0   ;;  %s3358_s29 = smov 0  }
   0x7 LB: > { %4354 = sst [smem:[#allocation13_spill]] %s3269_s24  ;;  %s2409_s30 = sadd.s32 4294967295, %s3289_s29   ;;  %s3289_s29 = sphi %s3358_s29, %s24_s29   ;;  %s3285_s28 = sphi %s3356_s28, %s4375_s28   ;;  %s3281_s27 = sphi %s3354_s27, %s4374_s27   ;;  %s3277_s26 = sphi %s3352_s26, %s4373_s26   ;;  %s3273_s25 = sphi %s3350_s25, %s4372_s25   ;;  %s3269_s24 = sphi %s3348_s24, %s4371_s24  }
   0x8   : > { %s2410_s8 = sadd.s32 4294967294, %s3289_s29   ;;  %p56_p0 = scmp.ne.s32.totalorder %s3273_s25, %s3269_s24 }
   0x9   : > { %p3382_p1 = scmp.eq.s32.totalorder %s2409_s30, 0  ;;  %p3386_p2 = scmp.eq.s32.totalorder %s2409_s30, 1 }
   0xa   : > { %p214_p3 = scmp.eq.s32.totalorder %s2410_s8, 1  ;;  %p2411_p5 = scmp.ge.s32.totalorder %s3289_s29, 1 }
   0xb   : > { %s4355_s9 = scalar_select %p3382_p1, 1, 0 }
   0xc   : > { %p3392_p4 = por %p3382_p1, %p56_p0  ;;  %p3397_p6 = por %p214_p3, %p56_p0 }
   0xd   : > { %p221_p7 = scmp.lt.s32.totalorder %s3289_s29, 3  ;;  %s3291_s14 = smov [#allocation6]  }
   0xe   : > { %s4357_s11 = scalar_select %p3392_p4, 1, 0 }
   0xf   : > { %s4358_s12 = scalar_select %p3397_p6, 1, 0 }
  0x10   : > { %p3402_p8 = pnand %p2411_p5, %p221_p7  ;;  %s239_s15 = sshll.u32 %s3291_s14, 4  ;;  %s3406_s15 = int_to_ptr.vmem [resolvable:$true] %s239_s15 }
  0x11   : > { %4359 = sst [smem:[#allocation14_spill]] %s4358_s12  ;;  %s3292_s17 = smov [#allocation8]  }
  0x12   : > { %p2789_p9 = pneg %p3402_p8  ;;  %s255_s18 = sshll.u32 %s3292_s17, 4  ;;  %s3417_s18 = int_to_ptr.vmem [resolvable:$true] %s255_s18 }
  0x13   : > { %s3117_s21 = scalar_lea.hbm %s4343_s3, 3072 }
  0x14   : > { %p3413_p11 = pnand %p2789_p9, %p3382_p1  ;;  %p3118_p12 = scmp.ne.s32.totalorder %s4343_s3, %s3117_s21 }
  0x15   : > { %p3124_p5 = scmp.lt.u32.totalorder %s3117_s21, %s4343_s3 }
  0x16   : > { %p3119_p13 = pneg %p3413_p11 }
  0x18   : > { %p3120_p0 = pnand %p3119_p13, %p3118_p12 }
  0x1a   : > { %p3121_p3 = pneg %p3120_p0 }
  0x1c   : > { %p3126_p7 = pnand %p3124_p5, %p3121_p3 }
  0x1e   : > { %3129 = shalt.err (!%p3126_p7)
}
  0x1f   : > { %s3130_s14 = scalar_lea.vmem %s3406_s15, 3072  ;;  %p3138_p1 = scmp.lt.s32.totalorder %s3406_s15, %s3406_s15 }
  0x20   : > { %p3131_p9 = scmp.ne.s32.totalorder %s3406_s15, %s3130_s14  ;;  %p3139_p12 = scmp.lt.s32.totalorder %s3130_s14, %s3130_s14 }
  0x22   : > { %p3133_p10 = pnand %p3131_p9, %p3119_p13  ;;  %p3140_p0 = por %p3139_p12, %p3138_p1 }
  0x24   : > { %p3134_p6 = pneg %p3133_p10 }
  0x26   : > { %p3141_p4 = pnand %p3140_p0, %p3134_p6 }
  0x28   : > { %3144 = shalt.err (!%p3141_p4)
}
  0x29   : > { %s3293_s17 = smov 192   ;;  %s3294_s19 = smov 12  }
  0x2a   : > { %2792 = dma.hbm_to_vmem [thread:$0]  (!%p3413_p11), %s4343_s3, 3072, %s3406_s15, [#allocation7], %s3293_s17, %s3293_s17, %s3294_s19  }
  0x2b   : > { %s3145_s30 = scalar_lea.hbm %s4345_s5, 1024 }
  0x2c   : > { %p3146_p1 = scmp.ne.s32.totalorder %s4345_s5, %s3145_s30  ;;  %p3152_p10 = scmp.lt.u32.totalorder %s3145_s30, %s4345_s5 }
  0x2e   : > { %p3148_p4 = pnand %p3146_p1, %p3119_p13 }
  0x30   : > { %p3149_p6 = pneg %p3148_p4 }
  0x32   : > { %p3154_p3 = pnand %p3152_p10, %p3149_p6 }
  0x34   : > { %3157 = shalt.err (!%p3154_p3)
}
  0x35   : > { %s3158_s15 = scalar_lea.vmem %s3417_s18, 1024  ;;  %p3166_p12 = scmp.lt.s32.totalorder %s3417_s18, %s3417_s18 }
  0x36   : > { %p3159_p5 = scmp.ne.s32.totalorder %s3417_s18, %s3158_s15  ;;  %p3167_p0 = scmp.lt.s32.totalorder %s3158_s15, %s3158_s15 }
  0x38   : > { %p3161_p7 = pnand %p3159_p5, %p3119_p13  ;;  %p3168_p1 = por %p3167_p0, %p3166_p12 }
  0x3a   : > { %p3162_p9 = pneg %p3161_p7 }
  0x3c   : > { %p3169_p4 = pnand %p3168_p1, %p3162_p9 }
  0x3e   : > { %3172 = shalt.err (!%p3169_p4)
}
  0x3f   : > { %s3295_s24 = smov 64   ;;  %s3296_s12 = smov 4  }
  0x40   : > { %2795 = dma.hbm_to_vmem [thread:$0]  (!%p3413_p11), %s4345_s5, 1024, %s3417_s18, [#allocation7], %s3295_s24, %s3295_s24, %s3296_s12  }
  0x41   : > { %s36_s20 = sadd.s32 1, %s3285_s28  ;;  %s43_s21 = sadd.s32 1, %s3277_s26 }
  0x42   : > { %p38_p13 = scmp.ge.s32.totalorder %s36_s20, 2  ;;  %p50_p6 = scmp.ne.s32.totalorder %s3277_s26, %s3273_s25 }
  0x43   : > { %p51_p10 = scmp.eq.s32.totalorder %s3289_s29, 0  ;;  %p2806_p3 = scmp.lt.s32.totalorder %s3289_s29, 2 }
  0x44   : > { %s4377_s20 = smov (%p38_p13, %s36_s20), 0  ;;  %p3481_p7 = por %p3386_p2, %p50_p6 }
  0x45   : > { %p52_p5 = por %p51_p10, %p50_p6  ;;  %s40_s16 = ssub.s32 %s3285_s28, %s4377_s20 }
  0x46   : > { %s4362_s22 = scalar_select %p3481_p7, 1, 0 }
  0x47   : > { %s272_s23 = sand.u32 1, %s3277_s26   ;;  %p41_p9 = scmp.eq.s32.totalorder %s40_s16, 0 }
  0x48   : > { %s2415_s18 = sshll.u32 %s272_s23, 6  ;;  %s2495_s30 = sshll.u32 %s3285_s28, 10 }
  0x49   : > { %s3490_s8 = scalar_select %p41_p9, %s3277_s26, %s43_s21  }
  0x4a   : > { %s3495_s24 = scalar_lea.hbm %s4340_s0, %s2495_s30  ;;  %s276_s10 = scalar_lea.vmem [#allocation3], %s2415_s18 }
  0x4b   : > { %s283_s12 = sshll.u32 %s276_s10, 4  ;;  %p3499_p2 = pnand %p2806_p3, %p52_p5  ;;  %s3503_s12 = int_to_ptr.vmem [resolvable:$true] %s283_s12 }
  0x4c   : > { %s3505_s19 = scalar_lea.sflag [#allocation4], %s272_s23  ;;  %s3173_s21 = scalar_lea.hbm %s3495_s24, 1024 }
  0x4d   : > { %p3174_p11 = scmp.ne.s32.totalorder %s3495_s24, %s3173_s21  ;;  %p3175_p12 = pneg %p3499_p2 }
  0x4e   : > { %s3178_s30 = scalar_lea.hbm %s4340_s0, 2048  ;;  %p3179_p4 = scmp.lt.u32.totalorder %s3495_s24, %s4340_s0 }
  0x4f   : > { %p3176_p0 = pnand %p3175_p12, %p3174_p11  ;;  %p3180_p13 = scmp.lt.u32.totalorder %s3178_s30, %s3173_s21 }
  0x50   : > { %p3182_p10 = scmp.lt.u32.totalorder %s3173_s21, %s3495_s24 }
  0x51   : > { %p3177_p1 = pneg %p3176_p0  ;;  %p3181_p6 = por %p3180_p13, %p3179_p4 }
  0x53   : > { %p3183_p3 = por %p3182_p10, %p3181_p6 }
  0x55   : > { %p3184_p5 = pnand %p3183_p3, %p3177_p1 }
  0x57   : > { %3187 = shalt.err (!%p3184_p5)
}
  0x58   : > { %s3188_s23 = scalar_lea.vmem %s3503_s12, 1024  ;;  %s3297_s10 = smov [#allocation3]  }
  0x59   : > { %p3189_p9 = scmp.ne.s32.totalorder %s3503_s12, %s3188_s23  ;;  %s3193_s16 = sshll.u32 %s3297_s10, 4  ;;  %s3194_s16 = int_to_ptr.vmem [resolvable:$false] %s3193_s16 }
  0x5a   : > { %s3195_s18 = scalar_lea.vmem %s3194_s16, 2048  ;;  %p3196_p7 = scmp.lt.s32.totalorder %s3503_s12, %s3194_s16 }
  0x5b   : > { %p3191_p11 = pnand %p3189_p9, %p3175_p12  ;;  %p3197_p4 = scmp.lt.s32.totalorder %s3195_s18, %s3188_s23 }
  0x5d   : > { %p3192_p0 = pneg %p3191_p11  ;;  %p3198_p13 = por %p3197_p4, %p3196_p7 }
  0x5f   : > { %p3199_p6 = pnand %p3198_p13, %p3192_p0 }
  0x61   : > { %3202 = shalt.err (!%p3199_p6)
}
  0x62   : > { %s3298_s21 = smov 128   ;;  %s3299_s30 = smov 8  }
  0x63   : > { %2799 = dma.hbm_to_vmem [thread:$0]  (!%p3499_p2), %s3495_s24, 1024, %s3503_s12, %s3505_s19, %s3298_s21, %s3298_s21, %s3299_s30  }
  0x64   : > { %295 = sbr.rel (%p3402_p8) target bundleno = 3278 (0xcce), region = 48  ;;  %s3536_s14 = sand.u32 (!%p3402_p8), 1, %s3273_s25  }
  0x65   : > { %s2419_s15 = sshll.u32 (!%p3402_p8), %s3536_s14, 6  ;;  %s298_s23 = scalar_lea.sflag (!%p3402_p8), [#allocation4], %s3536_s14 }
  0x66   : > { %s3542_s10 = scalar_lea.vmem (!%p3402_p8), [#allocation3], %s2419_s15  ;;  %p4364_p7 = scmp.ne.s32.totalorder (!%p3402_p8), %s4357_s11, 0 }
  0x6b   : > { %3256 = dma.done.wait (%p4364_p7), %s298_s23, 1024  }
  0x6c   : > { %3258 = vsyncadd (%p4364_p7), %s298_s23, 4294966272  ;;  %p4365_p2 = scmp.ne.s32.totalorder %s4355_s9, 0 }
  0x6e   : > { %3260 = dma.done.wait (%p4365_p2), [#allocation7], 4096  }
  0x6f   : > { %3262 = vsyncadd (%p4365_p2), [#allocation7], 4294963200  ;;  %v346_v0 = vld [vmem:[%s3542_s10] sm:$0xff]  ;;  %v348_v1 = vld [vmem:[%s3542_s10 + $0x10] sm:$0xff]  ;;  %v3300_v63 = vmov 0   ;;  %vm870_vm0 = vcmask 261120  }
  0x70   : > { %356 = vadd.xlane.f32.xlu0 %v346_v0  ;;  %360 = vadd.xlane.f32.xlu1 %v348_v1  ;;  %v347_v2 = vld [vmem:[%s3542_s10 + $0x8] sm:$0xff]  ;;  %v349_v3 = vld [vmem:[%s3542_s10 + $0x18] sm:$0xff]  ;;  %v350_v4 = vld [vmem:[%s3542_s10 + $0x20] sm:$0xff]  ;;  %vm960_vm5 = vcmask 523264   ;;  %s3302_s19 = smov 96   ;;  %s3303_s16 = smov 64  }
  0x71   : > { %v351_v5 = vld [vmem:[%s3542_s10 + $0x28] sm:$0xff]  ;;  %v352_v6 = vld [vmem:[%s3542_s10 + $0x30] sm:$0xff]  ;;  %v353_v7 = vld [vmem:[%s3542_s10 + $0x38] sm:$0xff]  ;;  %686 = vmatprep.mubr.bf16.mxu0 %v3300_v63  ;;  %s3304_s18 = smov 32   ;;  %vm2112_vm10 = vcmask 785408   ;;  %s339_s23 = scalar_lea.vmem [#allocation9], %s2419_s15 }
  0x72   : > { %v2933_v8 = vld [vmem:[#allocation6 + $0x4] ss:$12 sps:$4 sm:$0xff]   ;;  %v2935_v9 = vld [vmem:[#allocation6] ss:$12 sps:$4 sm:$0xff]   ;;  %v2936_v10 = vld [vmem:[#allocation6 + $0x1c] ss:$12 sps:$4 sm:$0xff]  }
  0x73   : > { %v2938_v11 = vld [vmem:[#allocation6 + $0x8] ss:$12 sps:$4 sm:$0xff]   ;;  %654 = vmatprep.subr.bf16.mxu0 %v2933_v8  ;;  %v2939_v44 = vld [vmem:[#allocation6 + $0x18] ss:$12 sps:$4 sm:$0xff]   ;;  %v2942_v46 = vld [vmem:[#allocation6 + $0x20] ss:$12 sps:$4 sm:$0xff]  }
  0x74   : > { %358 = vadd.xlane.f32.xlu0 %v347_v2  ;;  %362 = vadd.xlane.f32.xlu1 %v349_v3  ;;  %v2940_v45 = vld [vmem:[#allocation6 + $0x34] ss:$12 sps:$4 sm:$0xff]   ;;  %v2943_v47 = vld [vmem:[#allocation6 + $0x30] ss:$12 sps:$4 sm:$0xff]   ;;  %v2944_v48 = vld [vmem:[#allocation6 + $0x4c] ss:$12 sps:$4 sm:$0xff]  }
  0x75   : > { %655 = vmatpush1.bf16.msra.mxu0 %v2935_v9  ;;  %2585 = vmatprep.subr.bf16.mxu1 %v2938_v11  ;;  %v2946_v49 = vld [vmem:[#allocation6 + $0x38] ss:$12 sps:$4 sm:$0xff]   ;;  %v2947_v50 = vld [vmem:[#allocation6 + $0x48] ss:$12 sps:$4 sm:$0xff]   ;;  %v2950_v52 = vld [vmem:[#allocation6 + $0x50] ss:$12 sps:$4 sm:$0xff]  }
  0x76   : > { %656 = vmatprep.subr.bf16.mxu0 %v2936_v10  ;;  %2586 = vmatpush3.bf16.msra.mxu1 %v2938_v11  ;;  %v2948_v51 = vld [vmem:[#allocation6 + $0x64] ss:$12 sps:$4 sm:$0xff]   ;;  %v2951_v53 = vld [vmem:[#allocation6 + $0x60] ss:$12 sps:$4 sm:$0xff]   ;;  %v2952_v54 = vld [vmem:[#allocation6 + $0x7c] ss:$12 sps:$4 sm:$0xff]  }
  0x77   : > { %2587 = vmatprep.subr.bf16.mxu1 %v2942_v46  ;;  %v2954_v55 = vld [vmem:[#allocation6 + $0x68] ss:$12 sps:$4 sm:$0xff]   ;;  %v2955_v56 = vld [vmem:[#allocation6 + $0x78] ss:$12 sps:$4 sm:$0xff]   ;;  %v2958_v58 = vld [vmem:[#allocation6 + $0x80] ss:$12 sps:$4 sm:$0xff]  }
  0x78   : > { %364 = vadd.xlane.f32.xlu0 %v350_v4  ;;  %366 = vadd.xlane.f32.xlu1 %v351_v5  ;;  %v2956_v57 = vld [vmem:[#allocation6 + $0x94] ss:$12 sps:$4 sm:$0xff]   ;;  %v2959_v59 = vld [vmem:[#allocation6 + $0x90] ss:$12 sps:$4 sm:$0xff]   ;;  %v2960_v60 = vld [vmem:[#allocation6 + $0xac] ss:$12 sps:$4 sm:$0xff]  }
  0x79   : > { %657 = vmatpush1.bf16.msra.mxu0 %v2939_v44  ;;  %v2962_v61 = vld [vmem:[#allocation6 + $0x98] ss:$12 sps:$4 sm:$0xff]   ;;  %v2963_v62 = vld [vmem:[#allocation6 + $0xa8] ss:$12 sps:$4 sm:$0xff]   ;;  %s2302_s9 = sshll.u32 %s339_s23, 4  ;;  %s2496_s11 = sshll.u32 %s3281_s27, 10  ;;  %s4286_s9 = int_to_ptr.vmem [resolvable:$true] %s2302_s9 }
  0x7a   : > { %658 = vmatprep.subr.bf16.mxu0 %v2940_v45  ;;  %2588 = vmatpush3.bf16.msra.mxu1 %v2942_v46  ;;  %s4291_s24 = scalar_lea.hbm %s4347_s7, %s2496_s11  ;;  %s2287_s27 = scalar_lea.sflag [#allocation5], %s3536_s14 }
  0x7b   : > { %2589 = vmatprep.subr.bf16.mxu1 %v2946_v49  ;;  %p4366_p12 = scmp.ne.s32.totalorder %s4362_s22, 0  ;;  %s3305_s12 = smov [#allocation9]  }
  0x7c   : > { %368 = vadd.xlane.f32.xlu0 %v352_v6  ;;  %370 = vadd.xlane.f32.xlu1 %v353_v7  ;;  %s3207_s17 = sshll.u32 %s3305_s12, 4  ;;  %s3208_s17 = int_to_ptr.vmem [resolvable:$false] %s3207_s17 }
  0x7d   : > { %659 = vmatpush1.bf16.msra.mxu0 %v2943_v47  ;;  %p3210_p3 = scmp.lt.s32.totalorder %s4286_s9, %s3208_s17 }
  0x7e   : > { %660 = vmatprep.subr.bf16.mxu0 %v2944_v48  ;;  %2590 = vmatpush3.bf16.msra.mxu1 %v2946_v49 }
  0x7f   : > { %2591 = vmatprep.subr.bf16.mxu1 %v2950_v52 }
  0x81   : > { %661 = vmatpush1.bf16.msra.mxu0 %v2947_v50 }
  0x82   : > { %662 = vmatprep.subr.bf16.mxu0 %v2948_v51  ;;  %2592 = vmatpush3.bf16.msra.mxu1 %v2950_v52 }
  0x83   : > { %2593 = vmatprep.subr.bf16.mxu1 %v2954_v55 }
  0x85   : > { %663 = vmatpush1.bf16.msra.mxu0 %v2951_v53 }
  0x86   : > { %664 = vmatprep.subr.bf16.mxu0 %v2952_v54  ;;  %2594 = vmatpush3.bf16.msra.mxu1 %v2954_v55 }
  0x87   : > { %2595 = vmatprep.subr.bf16.mxu1 %v2958_v58 }
  0x89   : > { %665 = vmatpush1.bf16.msra.mxu0 %v2955_v56 }
  0x8a   : > { %666 = vmatprep.subr.bf16.mxu0 %v2956_v57  ;;  %2596 = vmatpush3.bf16.msra.mxu1 %v2958_v58 }
  0x8b   : > { %2597 = vmatprep.subr.bf16.mxu1 %v2962_v61 }
  0x8d   : > { %667 = vmatpush1.bf16.msra.mxu0 %v2959_v59 }
  0x8e   : > { %668 = vmatprep.subr.bf16.mxu0 %v2960_v60  ;;  %2598 = vmatpush3.bf16.msra.mxu1 %v2962_v61 }
  0x91   : > { %669 = vmatpush1.bf16.msra.mxu0 %v2963_v62 }
  0xfd   : > { %v357_v12 = vpop.xlane.xlu0 %356  ;;  %v361_v13 = vpop.xlane.xlu1 %360 }
  0xfe   : > { %v373_v14 = vmul.f32 0.0078125, %v357_v12  ;;  %v375_v15 = vmul.f32 0.0078125, %v361_v13 }
 0x100   : > { %v3560_v16 = vsub.f32 %v346_v0, %v373_v14  ;;  %v3562_v17 = vsub.f32 %v348_v1, %v375_v15  ;;  %v2964_v0 = vld [vmem:[#allocation6 + $0xb0] ss:$12 sps:$4 sm:$0xff]  }
 0x101   : > { %v359_v18 = vpop.xlane.xlu0 %358  ;;  %v363_v19 = vpop.xlane.xlu1 %362  ;;  %2599 = vmatprep.subr.bf16.mxu1 %v2964_v0 }
 0x102   : > { %v374_v20 = vmul.f32 0.0078125, %v359_v18  ;;  %v389_v21 = vmul.f32 %v3560_v16, %v3560_v16  ;;  %v376_v22 = vmul.f32 0.0078125, %v363_v19  ;;  %v391_v23 = vmul.f32 %v3562_v17, %v3562_v17  ;;  %2600 = vmatpush3.bf16.msra.mxu1 %v2964_v0 }
 0x104   : > { %397 = vadd.xlane.f32.xlu0 %v389_v21  ;;  %v3568_v24 = vsub.f32 %v347_v2, %v374_v20  ;;  %v3570_v25 = vsub.f32 %v349_v3, %v376_v22 }
 0x105   : > { %v365_v26 = vpop.xlane.xlu0 %364  ;;  %v367_v27 = vpop.xlane.xlu1 %366 }
 0x106   : > { %v377_v28 = vmul.f32 0.0078125, %v365_v26  ;;  %v390_v29 = vmul.f32 %v3568_v24, %v3568_v24  ;;  %v378_v30 = vmul.f32 0.0078125, %v367_v27  ;;  %v392_v31 = vmul.f32 %v3570_v25, %v3570_v25 }
 0x108   : > { %401 = vadd.xlane.f32.xlu0 %v391_v23  ;;  %399 = vadd.xlane.f32.xlu1 %v390_v29  ;;  %v3576_v32 = vsub.f32 %v350_v4, %v377_v28  ;;  %v3578_v33 = vsub.f32 %v351_v5, %v378_v30  ;;  %v2423_v30 = vld [vmem:[%s4341_s1] ss:$0 sm:$0xff] }
 0x109   : > { %v369_v34 = vpop.xlane.xlu0 %368  ;;  %v371_v35 = vpop.xlane.xlu1 %370 }
 0x10a   : > { %v379_v36 = vmul.f32 0.0078125, %v369_v34  ;;  %v393_v37 = vmul.f32 %v3576_v32, %v3576_v32  ;;  %v380_v38 = vmul.f32 0.0078125, %v371_v35  ;;  %v394_v39 = vmul.f32 %v3578_v33, %v3578_v33 }
 0x10c   : > { %403 = vadd.xlane.f32.xlu1 %v392_v31  ;;  %405 = vadd.xlane.f32.xlu0 %v393_v37  ;;  %v3584_v40 = vsub.f32 %v352_v6, %v379_v36  ;;  %v3586_v41 = vsub.f32 %v353_v7, %v380_v38  ;;  %v2424_v38 = vld [vmem:[%s4342_s2] ss:$0 sm:$0xff] }
 0x10e   : > { %v395_v42 = vmul.f32 %v3584_v40, %v3584_v40  ;;  %v396_v43 = vmul.f32 %v3586_v41, %v3586_v41 }
 0x110   : > { %407 = vadd.xlane.f32.xlu1 %v394_v39  ;;  %409 = vadd.xlane.f32.xlu0 %v395_v42 }
 0x114   : > { %411 = vadd.xlane.f32.xlu1 %v396_v43 }
 0x191   : > { %v398_v1 = vpop.xlane.xlu0 %397 }
 0x192   : > { %v413_v2 = vmul.f32 0.0078125, %v398_v1 }
 0x194   : > { %v421_v3 = vadd.f32 1e-05, %v413_v2 }
 0x195   : > { %v400_v4 = vpop.xlane.xlu1 %399  ;;  %v402_v5 = vpop.xlane.xlu0 %401 }
 0x196   : > { %2973 = vrsqrt.f32 %v421_v3  ;;  %v414_v6 = vmul.f32 0.0078125, %v400_v4  ;;  %v415_v7 = vmul.f32 0.0078125, %v402_v5  ;;  %v509_v3 = vld [vmem:[%s4344_s4] sm:$0x7] }
 0x198   : > { %v422_v8 = vadd.f32 1e-05, %v414_v6  ;;  %v423_v9 = vadd.f32 1e-05, %v415_v7 }
 0x199   : > { %v404_v10 = vpop.xlane.xlu1 %403  ;;  %v406_v11 = vpop.xlane.xlu0 %405 }
 0x19a   : > { %2975 = vrsqrt.f32 %v422_v8  ;;  %v416_v12 = vmul.f32 0.0078125, %v404_v10  ;;  %v417_v13 = vmul.f32 0.0078125, %v406_v11 }
 0x19b   : > { %2977 = vrsqrt.f32 %v423_v9 }
 0x19c   : > { %v424_v14 = vadd.f32 1e-05, %v416_v12  ;;  %v425_v15 = vadd.f32 1e-05, %v417_v13 }
 0x19d   : > { %v408_v18 = vpop.xlane.xlu1 %407  ;;  %v410_v19 = vpop.xlane.xlu0 %409 }
 0x19e   : > { %2979 = vrsqrt.f32 %v424_v14  ;;  %v418_v20 = vmul.f32 0.0078125, %v408_v18  ;;  %v419_v21 = vmul.f32 0.0078125, %v410_v19 }
 0x19f   : > { %2981 = vrsqrt.f32 %v425_v15 }
 0x1a0   : > { %v2974_v22 = vpop.eup %2973  ;;  %v426_v23 = vadd.f32 1e-05, %v418_v20  ;;  %v427_v26 = vadd.f32 1e-05, %v419_v21 }
 0x1a1   : > { %v412_v27 = vpop.xlane.xlu1 %411  ;;  %v437_v28 = vmul.f32 %v2974_v22, %v3560_v16 }
 0x1a2   : > { %2983 = vrsqrt.f32 %v426_v23  ;;  %v420_v29 = vmul.f32 0.0078125, %v412_v27 }
 0x1a3   : > { %2985 = vrsqrt.f32 %v427_v26  ;;  %v451_v37 = vmul.f32 %v2423_v30, %v437_v28 }
 0x1a4   : > { %v2976_v31 = vpop.eup %2975  ;;  %v428_v34 = vadd.f32 1e-05, %v420_v29 }
 0x1a5   : > { %v2978_v35 = vpop.eup %2977  ;;  %v438_v36 = vmul.f32 %v2976_v31, %v3568_v24  ;;  %v465_v45 = vadd.f32 %v2424_v38, %v451_v37 }
 0x1a6   : > { %2987 = vrsqrt.f32 %v428_v34  ;;  %v439_v16 = vmul.f32 %v2978_v35, %v3562_v17 }
 0x1a7   : > { %v452_v39 = vmul.f32 %v2423_v30, %v438_v36 }
 0x1a8   : > { %v2980_v42 = vpop.eup %2979  ;;  %v453_v43 = vmul.f32 %v2423_v30, %v439_v16 }
 0x1a9   : > { %v2982_v44 = vpop.eup %2981  ;;  %v466_v46 = vadd.f32 %v2424_v38, %v452_v39  ;;  %v440_v47 = vmul.f32 %v2980_v42, %v3570_v25 }
 0x1aa   : > { %v441_v48 = vmul.f32 %v2982_v44, %v3576_v32  ;;  %v467_v51 = vadd.f32 %v2424_v38, %v453_v43 }
 0x1ab   : > { %v473_v49 = vpack.c.bf16 %v466_v46, %v465_v45  ;;  %v454_v24 = vmul.f32 %v2423_v30, %v440_v47 }
 0x1ac   : > { %v2984_v50 = vpop.eup %2983  ;;  %v455_v54 = vmul.f32 %v2423_v30, %v441_v48 }
 0x1ad   : > { %v2986_v52 = vpop.eup %2985  ;;  %687 = vmatmul.mubr.bf16.vlgmr.msra.gmra.mrb[0].mxu0 %v473_v49  ;;  %2601 = vmatprep.mubr.bf16.mxu1 %v473_v49  ;;  %v468_v53 = vadd.f32 %v2424_v38, %v454_v24  ;;  %v442_v17 = vmul.f32 %v2984_v50, %v3578_v33 }
 0x1ae   : > { %696 = vmatprep.mubr.bf16.mxu0 %v3300_v63  ;;  %v443_v55 = vmul.f32 %v2986_v52, %v3584_v40  ;;  %v469_v32 = vadd.f32 %v2424_v38, %v455_v54  ;;  %v511_v40 = vlaneseq }
 0x1af   : > { %v474_v56 = vpack.c.bf16 %v468_v53, %v467_v51  ;;  %v456_v57 = vmul.f32 %v2423_v30, %v442_v17 }
 0x1b0   : > { %v2988_v25 = vpop.eup %2987  ;;  %v457_v60 = vmul.f32 %v2423_v30, %v443_v55  ;;  %v3611_v2 = vshrl.u32 %v511_v40, 7 }
 0x1b1   : > { %2602 = vmatmul.mubr.bf16.vlgmr.msra.gmra.mrb[0].mxu1 %v474_v56  ;;  %v470_v58 = vadd.f32 %v2424_v38, %v456_v57  ;;  %v444_v59 = vmul.f32 %v2988_v25, %v3586_v41 }
 0x1b2   : > { %v471_v0 = vadd.f32 %v2424_v38, %v457_v60  ;;  %v513_v41 = vsub.s32 0, %v3611_v2  ;;  %v517_v4 = vsub.s32 1, %v3611_v2  ;;  %v521_v6 = vsub.s32 2, %v3611_v2 }
 0x1b3   : > { %v475_v61 = vpack.c.bf16 %v470_v58, %v469_v32  ;;  %v458_v62 = vmul.f32 %v2423_v30, %v444_v59 }
 0x1b4   : > { %v3618_v5 = vrot.slane %v509_v3, %v513_v41  ;;  %v3621_v8 = vrot.slane %v509_v3, %v517_v4  ;;  %v522_v13 = vrot.slane %v509_v3, %v521_v6 }
 0x1b5   : > { %697 = vmatmul.mubr.bf16.gmra.mrb[4].mxu0 %v474_v56  ;;  %2605 = vmatprep.mubr.bf16.mxu1 %v475_v61  ;;  %v472_v33 = vadd.f32 %v2424_v38, %v458_v62 }
 0x1b6   : > { %706 = vmatprep.mubr.bf16.mxu0 %v3300_v63 }
 0x1b7   : > { %v476_v1 = vpack.c.bf16 %v472_v33, %v471_v0 }
 0x1b9   : > { %2606 = vmatmul.mubr.bf16.gmra.mrb[4].mxu1 %v476_v1 }
 0x1bd   : > { %707 = vmatmul.mubr.bf16.gmra.mrb[8].mxu0 %v475_v61 }
 0x1be   : > { %716 = vmatprep.mubr.bf16.mxu0 %v3300_v63 }
 0x1c5   : > { %717 = vmatmul.mubr.bf16.gmra.mrb[12].mxu0 %v476_v1 }
 0x280   : > { %v688_v7 = vpop.f32.mrb[0].mxu0 }
 0x281   : > { %v690_v63 = vpop.f32.mrb[1].mxu0  ;;  %v689_v10 = vadd.f32 %v688_v7, %v3618_v5 }
 0x282   : > { %v692_v9 = vpop.f32.mrb[2].mxu0  ;;  %v691_v14 = vadd.f32 %v690_v63, %v3621_v8 }
 0x283   : > { %v693_v11 = vadd.f32 %v692_v9, %v3618_v5  ;;  %v694_v12 = vpop.f32.mrb[3].mxu0 }
 0x284   : > { %v695_v15 = vadd.f32 %v694_v12, %v3621_v8  ;;  %v2603_v18 = vpop.f32.mrb[0].mxu1  ;;  %v837_v12 = vadd.s32 16, %v3611_v2 }
 0x285   : > { %v3627_v19 = vpack.c.bf16 %v693_v11, %v689_v10  ;;  %v761_v20 = vpop.f32.mrb[1].mxu1  ;;  %v770_v23 = vadd.f32 %v2603_v18, %v522_v13 }
 0x286   : > { %v3629_v21 = vpack.c.bf16 %v695_v15, %v691_v14  ;;  %v2604_v22 = vpop.f32.mrb[2].mxu1  ;;  %v762_v28 = vadd.f32 %v761_v20, %v522_v13  ;;  %v3301_v14 = vmov -100000.0  }
 0x287   : > { %v773_v26 = vadd.f32 %v2604_v22, %v522_v13  ;;  %v764_v27 = vpop.f32.mrb[3].mxu1  ;;  %2617 = vmatprep.mubr.msk.bf16.mxu0 %vm870_vm0, %v3627_v19  ;;  %v839_v22 = vadd.s32 32, %v3611_v2 }
 0x288   : > { %v765_v29 = vadd.f32 %v764_v27, %v522_v13  ;;  %v698_v30 = vpop.f32.mrb[4].mxu0  ;;  %2761 = vmatprep.subr.msk.bf16.mxu0 %vm870_vm0, %v3629_v21  ;;  %v884_v31 = vsel %vm870_vm0, %v3629_v21, 0 }
 0x289   : > { %v3637_v34 = vpack.c.bf16 %v773_v26, %v770_v23  ;;  %v700_v35 = vpop.f32.mrb[5].mxu0  ;;  %2610 = vmatpush3.bf16.xpose.msra.mxu0 %v884_v31  ;;  %v699_v38 = vadd.f32 %v698_v30, %v3618_v5  ;;  %v842_v26 = vadd.s32 56, %v3611_v2  ;;  %v841_v30 = vadd.s32 48, %v3611_v2 }
 0x28a   : > { %v3639_v36 = vpack.c.bf16 %v765_v29, %v762_v28  ;;  %v702_v37 = vpop.f32.mrb[6].mxu0  ;;  %v701_v42 = vadd.f32 %v700_v35, %v3621_v8 }
 0x28b   : > { %v703_v16 = vadd.f32 %v702_v37, %v3618_v5  ;;  %v704_v39 = vpop.f32.mrb[7].mxu0  ;;  %v840_v37 = vadd.s32 40, %v3611_v2 }
 0x28c   : > { %v705_v43 = vadd.f32 %v704_v39, %v3621_v8  ;;  %v2607_v44 = vpop.f32.mrb[4].mxu1  ;;  %2625 = vmatprep.subr.bf16.mxu1 %v3639_v36 }
 0x28d   : > { %v3646_v45 = vpack.c.bf16 %v703_v16, %v699_v38  ;;  %v777_v46 = vpop.f32.mrb[5].mxu1  ;;  %2626 = vmatpush3.bf16.msra.mxu1 %v3639_v36  ;;  %v786_v49 = vadd.f32 %v2607_v44, %v522_v13 }
 0x28e   : > { %v3649_v47 = vpack.c.bf16 %v705_v43, %v701_v42  ;;  %v2608_v48 = vpop.f32.mrb[6].mxu1  ;;  %2627 = vmatprep.subr.bf16.mxu1 %v3637_v34  ;;  %v778_v51 = vadd.f32 %v777_v46, %v522_v13 }
 0x28f   : > { %v789_v24 = vadd.f32 %v2608_v48, %v522_v13  ;;  %v780_v50 = vpop.f32.mrb[7].mxu1 }
 0x290   : > { %v781_v52 = vadd.f32 %v780_v50, %v522_v13  ;;  %v708_v53 = vpop.f32.mrb[8].mxu0  ;;  %2762 = vmatprep.subr.msk.bf16.mxu0 %vm870_vm0, %v3649_v47  ;;  %v887_v17 = vsel %vm870_vm0, %v3649_v47, 0  ;;  %v836_v13 = vadd.s32 8, %v3611_v2 }
 0x291   : > { %v3656_v54 = vpack.c.bf16 %v789_v24, %v786_v49  ;;  %v710_v55 = vpop.f32.mrb[9].mxu0  ;;  %2612 = vmatpush3.bf16.xpose.msra.mxu0 %v887_v17  ;;  %2628 = vmatpush3.bf16.msra.mxu1 %v3637_v34  ;;  %v709_v25 = vadd.f32 %v708_v53, %v3618_v5 }
 0x292   : > { %v3659_v56 = vpack.c.bf16 %v781_v52, %v778_v51  ;;  %v712_v57 = vpop.f32.mrb[10].mxu0  ;;  %v711_v59 = vadd.f32 %v710_v55, %v3621_v8 }
 0x293   : > { %v713_v32 = vadd.f32 %v712_v57, %v3618_v5  ;;  %v714_v58 = vpop.f32.mrb[11].mxu0 }
 0x294   : > { %v715_v60 = vadd.f32 %v714_v58, %v3621_v8  ;;  %2629 = vmatprep.subr.bf16.mxu1 %v3659_v56 }
 0x295   : > { %v3666_v61 = vpack.c.bf16 %v713_v32, %v709_v25  ;;  %2630 = vmatpush3.bf16.msra.mxu1 %v3659_v56 }
 0x296   : > { %v3669_v62 = vpack.c.bf16 %v715_v60, %v711_v59  ;;  %2631 = vmatprep.subr.bf16.mxu1 %v3656_v54 }
 0x298   : > { %v718_v0 = vpop.f32.mrb[12].mxu0  ;;  %2763 = vmatprep.subr.msk.bf16.mxu0 %vm870_vm0, %v3669_v62  ;;  %v890_v33 = vsel %vm870_vm0, %v3669_v62, 0 }
 0x299   : > { %v720_v1 = vpop.f32.mrb[13].mxu0  ;;  %2614 = vmatpush3.bf16.xpose.msra.mxu0 %v890_v33  ;;  %2632 = vmatpush3.bf16.msra.mxu1 %v3656_v54  ;;  %v719_v3 = vadd.f32 %v718_v0, %v3618_v5 }
 0x29a   : > { %v722_v41 = vpop.f32.mrb[14].mxu0  ;;  %v721_v7 = vadd.f32 %v720_v1, %v3621_v8 }
 0x29b   : > { %v723_v4 = vadd.f32 %v722_v41, %v3618_v5  ;;  %v724_v6 = vpop.f32.mrb[15].mxu0  ;;  %v853_v5 = vand.u32 127, %v511_v40 }
 0x29c   : > { %v725_v63 = vadd.f32 %v724_v6, %v3621_v8  ;;  %v838_v8 = vadd.s32 24, %v3611_v2 }
 0x29d   : > { %v3681_v9 = vpack.c.bf16 %v723_v4, %v719_v3  ;;  %vm854_vm1 = vcmp.le.s32.totalorder %v853_v5, %v3611_v2  ;;  %vm856_vm3 = vcmp.le.s32.totalorder %v853_v5, %v837_v12  ;;  %vm855_vm4 = vcmp.le.s32.totalorder %v853_v5, %v836_v13 }
 0x29e   : > { %v3683_v10 = vpack.c.bf16 %v725_v63, %v721_v7  ;;  %vm857_vm2 = vcmp.le.s32.totalorder %v853_v5, %v838_v8  ;;  %v3700_v15 = vsel %vm854_vm1, 0.0, %v3301_v14  ;;  %v3705_v40 = vsel %vm856_vm3, 0.0, %v3301_v14 }
 0x29f   : > { %v3702_v20 = vsel %vm857_vm2, 0.0, %v3301_v14  ;;  %v3709_v29 = vsel %vm855_vm4, 0.0, %v3301_v14  ;;  %vm858_vm6 = vcmp.le.s32.totalorder %v853_v5, %v839_v22  ;;  %vm861_vm7 = vcmp.le.s32.totalorder %v853_v5, %v842_v26 }
 0x2a0   : > { %2764 = vmatprep.subr.msk.bf16.mxu0 %vm870_vm0, %v3683_v10  ;;  %v893_v11 = vsel %vm870_vm0, %v3683_v10, 0  ;;  %vm860_vm8 = vcmp.le.s32.totalorder %v853_v5, %v841_v30  ;;  %v3718_v43 = vsel %vm858_vm6, 0.0, %v3301_v14  ;;  %vm859_vm9 = vcmp.le.s32.totalorder %v853_v5, %v840_v37 }
 0x2a1   : > { %2616 = vmatpush3.bf16.xpose.msra.mxu0 %v893_v11  ;;  %v3721_v2 = vsel %vm861_vm7, 0.0, %v3301_v14  ;;  %v3723_v48 = vsel %vm860_vm8, 0.0, %v3301_v14  ;;  %v3727_v52 = vsel %vm859_vm9, 0.0, %v3301_v14 }
 0x2a8   : > { %2618 = vmatmul.mubr.msk.bf16.vlgmr.msra.gmra.mrb[16].mxu0 %vm870_vm0, %v3646_v45 }
 0x2a9   : > { %2621 = vmatprep.mubr.msk.bf16.mxu0 %vm870_vm0, %v3666_v61 }
 0x2b0   : > { %2622 = vmatmul.mubr.msk.bf16.gmra.mrb[20].mxu0 %vm870_vm0, %v3681_v9 }
 0x37b   : > { %v2619_v18 = vpop.f32.mrb[16].mxu0 }
 0x37c   : > { %v929_v23 = vpop.f32.mrb[17].mxu0  ;;  %v938_v38 = vadd.f32 %v2619_v18, %v3705_v40 }
 0x37d   : > { %v930_v27 = vadd.f32 %v929_v23, %v3700_v15  ;;  %v2620_v28 = vpop.f32.mrb[18].mxu0 }
 0x37e   : > { %v941_v31 = vadd.f32 %v2620_v28, %v3702_v20  ;;  %v932_v35 = vpop.f32.mrb[19].mxu0  ;;  %v967_v46 = vsel %vm960_vm5, %v938_v38, -inf }
 0x37f   : > { %v961_v16 = vsel %vm960_vm5, %v930_v27, -inf  ;;  %v933_v39 = vadd.f32 %v932_v35, %v3709_v29 }
 0x380   : > { %962 = vmax.xlane.f32.xlu0 %v961_v16  ;;  %v970_v42 = vsel %vm960_vm5, %v941_v31, -inf }
 0x381   : > { %971 = vmax.xlane.f32.xlu1 %v970_v42  ;;  %v964_v24 = vsel %vm960_vm5, %v933_v39, -inf }
 0x383   : > { %v2623_v44 = vpop.f32.mrb[20].mxu0 }
 0x384   : > { %968 = vmax.xlane.f32.xlu0 %v967_v46  ;;  %v945_v49 = vpop.f32.mrb[21].mxu0  ;;  %v954_v55 = vadd.f32 %v2623_v44, %v3723_v48 }
 0x385   : > { %v946_v50 = vadd.f32 %v945_v49, %v3718_v43  ;;  %965 = vmax.xlane.f32.xlu1 %v964_v24  ;;  %v2624_v51 = vpop.f32.mrb[22].mxu0 }
 0x386   : > { %v957_v53 = vadd.f32 %v2624_v51, %v3721_v2  ;;  %v948_v17 = vpop.f32.mrb[23].mxu0  ;;  %v979_v58 = vsel %vm960_vm5, %v954_v55, -inf }
 0x387   : > { %v973_v57 = vsel %vm960_vm5, %v946_v50, -inf  ;;  %v949_v25 = vadd.f32 %v948_v17, %v3727_v52 }
 0x388   : > { %974 = vmax.xlane.f32.xlu0 %v973_v57  ;;  %v982_v32 = vsel %vm960_vm5, %v957_v53, -inf }
 0x389   : > { %983 = vmax.xlane.f32.xlu1 %v982_v32  ;;  %v976_v59 = vsel %vm960_vm5, %v949_v25, -inf }
 0x38c   : > { %980 = vmax.xlane.f32.xlu0 %v979_v58 }
 0x38d   : > { %977 = vmax.xlane.f32.xlu1 %v976_v59 }
 0x39e   : > { %1148 = vrot.lane.b32.xlu1 %v3649_v47, %s3302_s19 }
 0x3a2   : > { %1150 = vrot.lane.b32.xlu1 %v3669_v62, %s3302_s19 }
 0x40d   : > { %v963_v60 = vpop.xlane.xlu0 %962 }
 0x40e   : > { %v972_v0 = vpop.xlane.xlu1 %971  ;;  %v985_v1 = vsub.f32 %v930_v27, %v963_v60 }
 0x40f   : > { %v988_v33 = vsub.f32 %v941_v31, %v972_v0 }
 0x410   : > { %v993_v63 = vmul.f32 1.442695, %v985_v1 }
 0x411   : > { %v999_v41 = vmul.f32 1.442695, %v988_v33  ;;  %v969_v3 = vpop.xlane.xlu0 %968 }
 0x412   : > { %v987_v4 = vsub.f32 %v938_v38, %v969_v3  ;;  %v966_v6 = vpop.xlane.xlu1 %965 }
 0x413   : > { %2989 = vpow2.f32 %v999_v41  ;;  %v986_v7 = vsub.f32 %v933_v39, %v966_v6 }
 0x414   : > { %v997_v11 = vmul.f32 1.442695, %v987_v4 }
 0x415   : > { %v995_v5 = vmul.f32 1.442695, %v986_v7  ;;  %v975_v27 = vpop.xlane.xlu0 %974 }
 0x416   : > { %2991 = vpow2.f32 %v997_v11  ;;  %v984_v28 = vpop.xlane.xlu1 %983  ;;  %v989_v39 = vsub.f32 %v946_v50, %v975_v27 }
 0x417   : > { %2993 = vpow2.f32 %v995_v5  ;;  %v992_v30 = vsub.f32 %v957_v53, %v984_v28 }
 0x418   : > { %2995 = vpow2.f32 %v993_v63  ;;  %v1001_v46 = vmul.f32 1.442695, %v989_v39 }
 0x419   : > { %v981_v31 = vpop.xlane.xlu0 %980  ;;  %v1007_v38 = vmul.f32 1.442695, %v992_v30 }
 0x41a   : > { %v978_v35 = vpop.xlane.xlu1 %977  ;;  %v991_v37 = vsub.f32 %v954_v55, %v981_v31 }
 0x41b   : > { %v990_v16 = vsub.f32 %v949_v25, %v978_v35  ;;  %2997 = vpow2.f32 %v1007_v38 }
 0x41c   : > { %v1005_v42 = vmul.f32 1.442695, %v991_v37 }
 0x41d   : > { %v3740_v8 = vpop.eup %2989  ;;  %v1003_v44 = vmul.f32 1.442695, %v990_v16 }
 0x41e   : > { %v1018_v12 = vsel %vm960_vm5, %v3740_v8, 0.0  ;;  %2999 = vpow2.f32 %v1005_v42  ;;  %v1149_v25 = vpop.permute.xlu1 %1148 }
 0x41f   : > { %1019 = vadd.xlane.f32.xlu1 %v1018_v12  ;;  %3001 = vpow2.f32 %v1003_v44  ;;  %v1170_v27 = vsel %vm870_vm0, %v1149_v25, 0 }
 0x420   : > { %v3744_v13 = vpop.eup %2991  ;;  %3003 = vpow2.f32 %v1001_v46 }
 0x421   : > { %v3746_v14 = vpop.eup %2993  ;;  %v1015_v18 = vsel %vm960_vm5, %v3744_v13, 0.0 }
 0x422   : > { %v3750_v22 = vpop.eup %2995  ;;  %1016 = vadd.xlane.f32.xlu0 %v1015_v18  ;;  %v1012_v23 = vsel %vm960_vm5, %v3746_v14, 0.0  ;;  %v1151_v32 = vpop.permute.xlu1 %1150 }
 0x423   : > { %1013 = vadd.xlane.f32.xlu1 %v1012_v23  ;;  %v1009_v26 = vsel %vm960_vm5, %v3750_v22, 0.0 }
 0x425   : > { %v3760_v49 = vpop.eup %2997 }
 0x426   : > { %1010 = vadd.xlane.f32.xlu0 %v1009_v26  ;;  %v1030_v51 = vsel %vm960_vm5, %v3760_v49, 0.0 }
 0x428   : > { %v3762_v24 = vpop.eup %2999 }
 0x429   : > { %v3766_v53 = vpop.eup %3001  ;;  %v1027_v50 = vsel %vm960_vm5, %v3762_v24, 0.0 }
 0x42a   : > { %v3770_v17 = vpop.eup %3003  ;;  %v1024_v55 = vsel %vm960_vm5, %v3766_v53, 0.0 }
 0x42b   : > { %v1021_v57 = vsel %vm960_vm5, %v3770_v17, 0.0 }
 0x434   : > { %1436 = vrot.lane.b32.xlu1 %v3629_v21, %s3303_s16 }
 0x43c   : > { %1146 = vrot.lane.b32.xlu0 %v3629_v21, %s3302_s19 }
 0x458   : > { %1031 = vadd.xlane.f32.xlu1 %v1030_v51 }
 0x45b   : > { %1028 = vadd.xlane.f32.xlu0 %v1027_v50 }
 0x45c   : > { %1025 = vadd.xlane.f32.xlu1 %v1024_v55 }
 0x45f   : > { %1022 = vadd.xlane.f32.xlu0 %v1021_v57 }
 0x46d   : > { %1438 = vrot.lane.b32.xlu1 %v3649_v47, %s3303_s16 }
 0x471   : > { %1136 = vrot.lane.b32.xlu1 %v3646_v45, %s3302_s19 }
 0x475   : > { %1138 = vrot.lane.b32.xlu1 %v3666_v61, %s3302_s19  ;;  %1152 = vrot.lane.b32.xlu0 %v3683_v10, %s3302_s19 }
 0x479   : > { %1442 = vrot.lane.b32.xlu1 %v3683_v10, %s3303_s16  ;;  %1134 = vrot.lane.b32.xlu0 %v3627_v19, %s3302_s19 }
 0x47d   : > { %1430 = vrot.lane.b32.xlu1 %v3646_v45, %s3303_s16  ;;  %1440 = vrot.lane.b32.xlu0 %v3669_v62, %s3303_s16 }
 0x481   : > { %1434 = vrot.lane.b32.xlu1 %v3681_v9, %s3303_s16  ;;  %1140 = vrot.lane.b32.xlu0 %v3681_v9, %s3302_s19 }
 0x485   : > { %1428 = vrot.lane.b32.xlu0 %v3627_v19, %s3303_s16 }
 0x489   : > { %1432 = vrot.lane.b32.xlu0 %v3666_v61, %s3303_s16 }
 0x4ac   : > { %v1020_v58 = vpop.xlane.xlu1 %1019 }
 0x4af   : > { %v1017_v59 = vpop.xlane.xlu0 %1016 }
 0x4b0   : > { %v1014_v60 = vpop.xlane.xlu1 %1013  ;;  %3005 = vrcp.f32 %v1017_v59 }
 0x4b1   : > { %3007 = vrcp.f32 %v1014_v60 }
 0x4b2   : > { %3009 = vrcp.f32 %v1020_v58 }
 0x4b3   : > { %v1011_v0 = vpop.xlane.xlu0 %1010 }
 0x4b4   : > { %3011 = vrcp.f32 %v1011_v0  ;;  %v1437_v33 = vpop.permute.xlu1 %1436 }
 0x4b5   : > { %v1457_v1 = vsel %vm870_vm0, %v1437_v33, 0  ;;  %2769 = vmatprep.subr.msk.bf16.mxu0 %vm870_vm0, %v1437_v33 }
 0x4b6   : > { %2674 = vmatpush3.bf16.xpose.msra.mxu0 %v1457_v1 }
 0x4b7   : > { %v1147_v41 = vpop.permute.xlu0 %1146 }
 0x4b8   : > { %2765 = vmatprep.subr.msk.bf16.mxu1 %vm870_vm0, %v1147_v41  ;;  %v1167_v26 = vsel %vm870_vm0, %v1147_v41, 0 }
 0x4ba   : > { %v3006_v3 = vpop.eup %3005 }
 0x4bb   : > { %v3008_v4 = vpop.eup %3007  ;;  %v1043_v63 = vmul.f32 %v3006_v3, %v3744_v13  ;;  %v1173_v13 = vsel %vm870_vm0, %v1151_v32, 0 }
 0x4bc   : > { %v3010_v6 = vpop.eup %3009  ;;  %v1042_v5 = vmul.f32 %v3008_v4, %v3746_v14 }
 0x4bd   : > { %v1044_v12 = vmul.f32 %v3010_v6, %v3740_v8 }
 0x4be   : > { %v3012_v7 = vpop.eup %3011 }
 0x4bf   : > { %v1041_v11 = vmul.f32 %v3012_v7, %v3750_v22  ;;  %v1050_v23 = vpack.c.bf16 %v1044_v12, %v1043_v63 }
 0x4c1   : > { %v1049_v18 = vpack.c.bf16 %v1042_v5, %v1041_v11 }
 0x4c3   : > { %2633 = vmatprep.mubr.msk.bf16.mxu1 %vm960_vm5, %v1049_v18 }
 0x4c4   : > { %2634 = vmatmul.mubr.msk.bf16.vlgmr.msra.gmra.mrb[8].mxu1 %vm960_vm5, %v1050_v23 }
 0x4c5   : > { %2642 = vmatpush3.bf16.xpose.msra.mxu1 %v1167_v26 }
 0x4c6   : > { %2766 = vmatprep.subr.msk.bf16.mxu1 %vm870_vm0, %v1149_v25 }
 0x4cd   : > { %2644 = vmatpush3.bf16.xpose.msra.mxu1 %v1170_v27 }
 0x4ce   : > { %2767 = vmatprep.subr.msk.bf16.mxu1 %vm870_vm0, %v1151_v32 }
 0x4d5   : > { %2646 = vmatpush3.bf16.xpose.msra.mxu1 %v1173_v13 }
 0x4e5   : > { %v1032_v8 = vpop.xlane.xlu1 %1031 }
 0x4e8   : > { %v1029_v14 = vpop.xlane.xlu0 %1028 }
 0x4e9   : > { %v1026_v22 = vpop.xlane.xlu1 %1025  ;;  %3013 = vrcp.f32 %v1029_v14 }
 0x4ea   : > { %3015 = vrcp.f32 %v1026_v22 }
 0x4eb   : > { %3017 = vrcp.f32 %v1032_v8 }
 0x4ec   : > { %v1023_v28 = vpop.xlane.xlu0 %1022 }
 0x4ed   : > { %3019 = vrcp.f32 %v1023_v28  ;;  %v1439_v30 = vpop.permute.xlu1 %1438 }
 0x4ee   : > { %v1460_v31 = vsel %vm870_vm0, %v1439_v30, 0  ;;  %2770 = vmatprep.subr.msk.bf16.mxu0 %vm870_vm0, %v1439_v30 }
 0x4ef   : > { %2676 = vmatpush3.bf16.xpose.msra.mxu0 %v1460_v31 }
 0x4f0   : > { %v1153_v35 = vpop.permute.xlu0 %1152 }
 0x4f1   : > { %v1176_v37 = vsel %vm870_vm0, %v1153_v35, 0  ;;  %v1137_v38 = vpop.permute.xlu1 %1136  ;;  %2768 = vmatprep.subr.msk.bf16.mxu1 %vm870_vm0, %v1153_v35 }
 0x4f2   : > { %2648 = vmatpush3.bf16.xpose.msra.mxu1 %v1176_v37 }
 0x4f3   : > { %v3014_v16 = vpop.eup %3013 }
 0x4f4   : > { %v1135_v39 = vpop.permute.xlu0 %1134  ;;  %v3016_v42 = vpop.eup %3015  ;;  %v1047_v50 = vmul.f32 %v3014_v16, %v3762_v24 }
 0x4f5   : > { %v1139_v44 = vpop.permute.xlu1 %1138  ;;  %v3018_v46 = vpop.eup %3017  ;;  %v1046_v25 = vmul.f32 %v3016_v42, %v3766_v53 }
 0x4f6   : > { %v1048_v59 = vmul.f32 %v3018_v46, %v3760_v49 }
 0x4f7   : > { %v3020_v51 = vpop.eup %3019 }
 0x4f8   : > { %v1441_v55 = vpop.permute.xlu0 %1440  ;;  %v1045_v57 = vmul.f32 %v3020_v51, %v3770_v17  ;;  %v1052_v0 = vpack.c.bf16 %v1048_v59, %v1047_v50 }
 0x4f9   : > { %v1463_v32 = vsel %vm870_vm0, %v1441_v55, 0  ;;  %v1443_v58 = vpop.permute.xlu1 %1442  ;;  %2771 = vmatprep.subr.msk.bf16.mxu0 %vm870_vm0, %v1441_v55 }
 0x4fa   : > { %2678 = vmatpush3.bf16.xpose.msra.mxu0 %v1463_v32  ;;  %v1051_v60 = vpack.c.bf16 %v1046_v25, %v1045_v57  ;;  %v1466_v17 = vsel %vm870_vm0, %v1443_v58, 0 }
 0x4fb   : > { %2772 = vmatprep.subr.msk.bf16.mxu0 %vm870_vm0, %v1443_v58 }
 0x4fc   : > { %2637 = vmatprep.mubr.msk.bf16.mxu1 %vm960_vm5, %v1051_v60  ;;  %v1141_v24 = vpop.permute.xlu0 %1140 }
 0x4fd   : > { %2638 = vmatmul.mubr.msk.bf16.gmra.mrb[12].mxu1 %vm960_vm5, %v1052_v0  ;;  %v1431_v49 = vpop.permute.xlu1 %1430 }
 0x4fe   : > { %2649 = vmatprep.mubr.msk.bf16.mxu1 %vm870_vm0, %v1135_v39 }
 0x500   : > { %v1429_v53 = vpop.permute.xlu0 %1428 }
 0x501   : > { %2681 = vmatprep.mubr.msk.bf16.mxu0 %vm870_vm0, %v1429_v53  ;;  %v1435_v1 = vpop.permute.xlu1 %1434 }
 0x502   : > { %2680 = vmatpush3.bf16.xpose.msra.mxu0 %v1466_v17 }
 0x504   : > { %v1433_v33 = vpop.permute.xlu0 %1432 }
 0x505   : > { %2650 = vmatmul.mubr.msk.bf16.vlgmr.msra.gmra.mrb[16].mxu1 %vm870_vm0, %v1137_v38 }
 0x506   : > { %2653 = vmatprep.mubr.msk.bf16.mxu1 %vm870_vm0, %v1139_v44 }
 0x509   : > { %2682 = vmatmul.mubr.msk.bf16.vlgmr.msra.gmra.mrb[24].mxu0 %vm870_vm0, %v1431_v49 }
 0x50a   : > { %2685 = vmatprep.mubr.msk.bf16.mxu0 %vm870_vm0, %v1433_v33 }
 0x50d   : > { %2654 = vmatmul.mubr.msk.bf16.gmra.mrb[20].mxu1 %vm870_vm0, %v1141_v24 }
 0x511   : > { %2686 = vmatmul.mubr.msk.bf16.gmra.mrb[28].mxu0 %vm870_vm0, %v1435_v1 }
 0x597   : > { %v3836_v41 = vpop.f32.mrb[8].mxu1 }
 0x598   : > { %v3838_v3 = vpop.f32.mrb[9].mxu1 }
 0x599   : > { %v3840_v4 = vpop.f32.mrb[10].mxu1 }
 0x59a   : > { %v3842_v6 = vpop.f32.mrb[11].mxu1 }
 0x5d0   : > { %v3844_v7 = vpop.f32.mrb[12].mxu1 }
 0x5d1   : > { %v3846_v63 = vpop.f32.mrb[13].mxu1 }
 0x5d2   : > { %v3848_v11 = vpop.f32.mrb[14].mxu1 }
 0x5d3   : > { %v3850_v5 = vpop.f32.mrb[15].mxu1 }
 0x5d8   : > { %v2651_v12 = vpop.f32.mrb[16].mxu1 }
 0x5d9   : > { %v1212_v18 = vpop.f32.mrb[17].mxu1  ;;  %v1221_v17 = vadd.f32 %v2651_v12, %v3705_v40 }
 0x5da   : > { %v2652_v23 = vpop.f32.mrb[18].mxu1  ;;  %v3896_v33 = vadd.f32 %v1212_v18, %v3700_v15 }
 0x5db   : > { %v1215_v26 = vpop.f32.mrb[19].mxu1  ;;  %v1249_v1 = vsel %vm960_vm5, %v1221_v17, -inf }
 0x5dc   : > { %v2683_v27 = vpop.f32.mrb[24].mxu0  ;;  %v3893_v49 = vadd.f32 %v1215_v26, %v3709_v29 }
 0x5dd   : > { %v1502_v13 = vpop.f32.mrb[25].mxu0  ;;  %v3854_v28 = vadd.f32 %v2683_v27, %v3705_v40 }
 0x5de   : > { %v1503_v8 = vadd.f32 %v1502_v13, %v3700_v15  ;;  %v2684_v14 = vpop.f32.mrb[26].mxu0  ;;  %v1246_v27 = vsel %vm960_vm5, %v3893_v49, -inf  ;;  %v3902_v13 = vadd.f32 %v2652_v23, %v3702_v20 }
 0x5df   : > { %v1505_v22 = vpop.f32.mrb[27].mxu0  ;;  %v1514_v38 = vadd.f32 %v2684_v14, %v3702_v20  ;;  %v1539_v46 = vsel %vm960_vm5, %v3854_v28, -inf  ;;  %v1243_v14 = vsel %vm960_vm5, %v3896_v33, -inf }
 0x5e0   : > { %v1506_v30 = vadd.f32 %v1505_v22, %v3709_v29  ;;  %v2655_v31 = vpop.f32.mrb[20].mxu1  ;;  %v1533_v35 = vsel %vm960_vm5, %v1503_v8, -inf  ;;  %v1252_v18 = vsel %vm960_vm5, %v3902_v13, -inf }
 0x5e1   : > { %v1228_v37 = vpop.f32.mrb[21].mxu1  ;;  %1534 = vmax.xlane.f32.xlu0 %v1533_v35  ;;  %v1542_v57 = vsel %vm960_vm5, %v1514_v38, -inf  ;;  %v3907_v12 = vadd.f32 %v2655_v31, %v3723_v48 }
 0x5e2   : > { %v3859_v16 = vpop.f32.mrb[22].mxu1  ;;  %v1536_v39 = vsel %vm960_vm5, %v1506_v30, -inf  ;;  %v3912_v26 = vadd.f32 %v1228_v37, %v3718_v43 }
 0x5e3   : > { %v3862_v42 = vpop.f32.mrb[23].mxu1  ;;  %1537 = vmax.xlane.f32.xlu1 %v1536_v39  ;;  %v1261_v22 = vsel %vm960_vm5, %v3907_v12, -inf }
 0x5e4   : > { %v2687_v44 = vpop.f32.mrb[28].mxu0  ;;  %v1255_v23 = vsel %vm960_vm5, %v3912_v26, -inf }
 0x5e5   : > { %1540 = vmax.xlane.f32.xlu0 %v1539_v46  ;;  %v1518_v51 = vpop.f32.mrb[29].mxu0  ;;  %v3871_v32 = vadd.f32 %v2687_v44, %v3723_v48 }
 0x5e6   : > { %v3867_v50 = vadd.f32 %v1518_v51, %v3718_v43  ;;  %v2688_v55 = vpop.f32.mrb[30].mxu0 }
 0x5e7   : > { %1543 = vmax.xlane.f32.xlu1 %v1542_v57  ;;  %v1521_v25 = vpop.f32.mrb[31].mxu0  ;;  %v3879_v60 = vadd.f32 %v2688_v55, %v3721_v2  ;;  %v1551_v24 = vsel %vm960_vm5, %v3871_v32, -inf }
 0x5e8   : > { %v3874_v58 = vadd.f32 %v1521_v25, %v3727_v52  ;;  %v1545_v59 = vsel %vm960_vm5, %v3867_v50, -inf }
 0x5e9   : > { %1546 = vmax.xlane.f32.xlu0 %v1545_v59  ;;  %v1554_v53 = vsel %vm960_vm5, %v3879_v60, -inf }
 0x5ea   : > { %v1548_v0 = vsel %vm960_vm5, %v3874_v58, -inf }
 0x5eb   : > { %1549 = vmax.xlane.f32.xlu1 %v1548_v0 }
 0x5ed   : > { %1552 = vmax.xlane.f32.xlu0 %v1551_v24 }
 0x5ef   : > { %1555 = vmax.xlane.f32.xlu1 %v1554_v53 }
 0x600   : > { %1341 = vrot.lane.b32.xlu1 %v3637_v34, %s3302_s19 }
 0x603   : > { %1339 = vrot.lane.b32.xlu0 %v3639_v36, %s3302_s19 }
 0x622   : > { %1250 = vmax.xlane.f32.xlu0 %v1249_v1 }
 0x624   : > { %1247 = vmax.xlane.f32.xlu1 %v1246_v27 }
 0x626   : > { %1244 = vmax.xlane.f32.xlu0 %v1243_v14 }
 0x62a   : > { %1253 = vmax.xlane.f32.xlu0 %v1252_v18 }
 0x62e   : > { %1262 = vmax.xlane.f32.xlu0 %v1261_v22 }
 0x632   : > { %1256 = vmax.xlane.f32.xlu0 %v1255_v23 }
 0x648   : > { %1343 = vrot.lane.b32.xlu0 %v3659_v56, %s3302_s19 }
 0x66e   : > { %v1535_v31 = vpop.xlane.xlu0 %1534 }
 0x66f   : > { %v1557_v35 = vsub.f32 %v1503_v8, %v1535_v31 }
 0x670   : > { %v1538_v39 = vpop.xlane.xlu1 %1537 }
 0x671   : > { %v1565_v44 = vmul.f32 1.442695, %v1557_v35  ;;  %v1558_v46 = vsub.f32 %v1506_v30, %v1538_v39  ;;  %v3949_v39 = vadd.f32 %v3859_v16, %v3721_v2 }
 0x672   : > { %v1541_v51 = vpop.xlane.xlu0 %1540 }
 0x673   : > { %3021 = vpow2.f32 %v1565_v44  ;;  %v1567_v37 = vmul.f32 1.442695, %v1558_v46  ;;  %v1559_v55 = vsub.f32 %v3854_v28, %v1541_v51 }
 0x674   : > { %v1544_v57 = vpop.xlane.xlu1 %1543 }
 0x675   : > { %3023 = vpow2.f32 %v1567_v37  ;;  %v1569_v25 = vmul.f32 1.442695, %v1559_v55  ;;  %v1560_v59 = vsub.f32 %v1514_v38, %v1544_v57  ;;  %v3953_v37 = vadd.f32 %v3862_v42, %v3727_v52 }
 0x676   : > { %v3921_v0 = vpop.xlane.xlu0 %1546  ;;  %v1264_v57 = vsel %vm960_vm5, %v3949_v39, -inf }
 0x677   : > { %3025 = vpow2.f32 %v1569_v25  ;;  %v1571_v24 = vmul.f32 1.442695, %v1560_v59  ;;  %v1258_v16 = vsel %vm960_vm5, %v3953_v37, -inf }
 0x678   : > { %v3923_v53 = vpop.xlane.xlu1 %1549 }
 0x679   : > { %3027 = vpow2.f32 %v1571_v24 }
 0x67a   : > { %v3925_v1 = vpop.xlane.xlu0 %1552 }
 0x67c   : > { %v3927_v8 = vpop.xlane.xlu1 %1555 }
 0x67d   : > { %v3929_v30 = vpop.eup %3021 }
 0x67e   : > { %v1340_v27 = vpop.permute.xlu0 %1339  ;;  %v1581_v28 = vsel %vm960_vm5, %v3929_v30, 0.0 }
 0x67f   : > { %v3933_v14 = vpop.eup %3023  ;;  %1582 = vadd.xlane.f32.xlu1 %v1581_v28  ;;  %2657 = vmatprep.subr.bf16.mxu1 %v1340_v27 }
 0x680   : > { %v1342_v38 = vpop.permute.xlu1 %1341  ;;  %2658 = vmatpush3.bf16.msra.mxu1 %v1340_v27  ;;  %v1584_v18 = vsel %vm960_vm5, %v3933_v14, 0.0 }
 0x681   : > { %v3937_v22 = vpop.eup %3025  ;;  %1585 = vadd.xlane.f32.xlu0 %v1584_v18  ;;  %2659 = vmatprep.subr.bf16.mxu1 %v1342_v38 }
 0x682   : > { %v1587_v23 = vsel %vm960_vm5, %v3937_v22, 0.0 }
 0x683   : > { %v3941_v31 = vpop.eup %3027 }
 0x684   : > { %2660 = vmatpush3.bf16.msra.mxu1 %v1342_v38  ;;  %v1590_v35 = vsel %vm960_vm5, %v3941_v31, 0.0 }
 0x685   : > { %1588 = vadd.xlane.f32.xlu0 %v1587_v23 }
 0x689   : > { %1591 = vadd.xlane.f32.xlu0 %v1590_v35 }
 0x690   : > { %1345 = vrot.lane.b32.xlu1 %v3656_v54, %s3302_s19 }
 0x6af   : > { %v1251_v44 = vpop.xlane.xlu0 %1250 }
 0x6b0   : > { %v1269_v46 = vsub.f32 %v1221_v17, %v1251_v44 }
 0x6b1   : > { %v1248_v35 = vpop.xlane.xlu1 %1247 }
 0x6b2   : > { %v1279_v51 = vmul.f32 1.442695, %v1269_v46  ;;  %v1268_v44 = vsub.f32 %v3893_v49, %v1248_v35 }
 0x6b3   : > { %v1245_v55 = vpop.xlane.xlu0 %1244 }
 0x6b4   : > { %3029 = vpow2.f32 %v1279_v51  ;;  %v1267_v25 = vsub.f32 %v3896_v33, %v1245_v55  ;;  %1265 = vmax.xlane.f32.xlu1 %v1264_v57  ;;  %v1277_v55 = vmul.f32 1.442695, %v1268_v44 }
 0x6b6   : > { %v1275_v59 = vmul.f32 1.442695, %v1267_v25 }
 0x6b7   : > { %v1254_v24 = vpop.xlane.xlu0 %1253 }
 0x6b8   : > { %3031 = vpow2.f32 %v1275_v59  ;;  %1259 = vmax.xlane.f32.xlu1 %v1258_v16  ;;  %v1270_v23 = vsub.f32 %v3902_v13, %v1254_v24  ;;  %v1561_v59 = vsub.f32 %v3867_v50, %v3921_v0  ;;  %v1563_v13 = vsub.f32 %v3871_v32, %v3925_v1 }
 0x6b9   : > { %v1564_v24 = vsub.f32 %v3879_v60, %v3927_v8 }
 0x6ba   : > { %v1281_v46 = vmul.f32 1.442695, %v1270_v23 }
 0x6bb   : > { %v1263_v17 = vpop.xlane.xlu0 %1262  ;;  %v1579_v50 = vmul.f32 1.442695, %v1564_v24 }
 0x6bc   : > { %v1273_v51 = vsub.f32 %v3907_v12, %v1263_v17  ;;  %3033 = vpow2.f32 %v1281_v46  ;;  %v1577_v12 = vmul.f32 1.442695, %v1563_v13 }
 0x6bd   : > { %3035 = vpow2.f32 %v1277_v55 }
 0x6be   : > { %v3960_v27 = vpop.eup %3029  ;;  %v1287_v25 = vmul.f32 1.442695, %v1273_v51 }
 0x6bf   : > { %v1257_v42 = vpop.xlane.xlu0 %1256  ;;  %v1297_v28 = vsel %vm960_vm5, %v3960_v27, 0.0 }
 0x6c0   : > { %1298 = vadd.xlane.f32.xlu0 %v1297_v28  ;;  %v1271_v57 = vsub.f32 %v3912_v26, %v1257_v42  ;;  %3037 = vpow2.f32 %v1287_v25  ;;  %v1573_v28 = vmul.f32 1.442695, %v1561_v59 }
 0x6c2   : > { %v3964_v38 = vpop.eup %3031  ;;  %v1283_v16 = vmul.f32 1.442695, %v1271_v57 }
 0x6c3   : > { %v1344_v18 = vpop.permute.xlu0 %1343  ;;  %v1291_v33 = vsel %vm960_vm5, %v3964_v38, 0.0 }
 0x6c4   : > { %1292 = vadd.xlane.f32.xlu0 %v1291_v33  ;;  %2661 = vmatprep.subr.bf16.mxu1 %v1344_v18  ;;  %3039 = vpow2.f32 %v1283_v16 }
 0x6c5   : > { %2662 = vmatpush3.bf16.msra.mxu1 %v1344_v18  ;;  %3041 = vpow2.f32 %v1573_v28 }
 0x6c6   : > { %v3982_v49 = vpop.eup %3033  ;;  %3043 = vpow2.f32 %v1577_v12 }
 0x6c7   : > { %v1300_v26 = vsel %vm960_vm5, %v3982_v49, 0.0  ;;  %v3988_v17 = vpop.eup %3035  ;;  %3045 = vpow2.f32 %v1579_v50 }
 0x6c8   : > { %v1294_v32 = vsel %vm960_vm5, %v3988_v17, 0.0 }
 0x6c9   : > { %1627 = vrot.lane.b32.xlu1 %v3637_v34, %s3303_s16 }
 0x6ca   : > { %v3990_v0 = vpop.eup %3037 }
 0x6cb   : > { %v1309_v60 = vsel %vm960_vm5, %v3990_v0, 0.0 }
 0x6cd   : > { %1629 = vrot.lane.b32.xlu1 %v3659_v56, %s3303_s16 }
 0x6ce   : > { %v3994_v1 = vpop.eup %3039 }
 0x6cf   : > { %v1303_v8 = vsel %vm960_vm5, %v3994_v1, 0.0  ;;  %v4000_v42 = vpop.eup %3041 }
 0x6d0   : > { %v1593_v18 = vsel %vm960_vm5, %v4000_v42, 0.0  ;;  %v4004_v33 = vpop.eup %3043 }
 0x6d1   : > { %v1599_v23 = vsel %vm960_vm5, %v4004_v33, 0.0  ;;  %v4008_v35 = vpop.eup %3045 }
 0x6d2   : > { %v1602_v44 = vsel %vm960_vm5, %v4008_v35, 0.0 }
 0x6da   : > { %1625 = vrot.lane.b32.xlu0 %v3639_v36, %s3303_s16 }
 0x6f1   : > { %1301 = vadd.xlane.f32.xlu1 %v1300_v26 }
 0x6f5   : > { %1295 = vadd.xlane.f32.xlu1 %v1294_v32 }
 0x6f9   : > { %1310 = vadd.xlane.f32.xlu1 %v1309_v60  ;;  %1304 = vadd.xlane.f32.xlu0 %v1303_v8 }
 0x6fd   : > { %1594 = vadd.xlane.f32.xlu0 %v1593_v18 }
 0x701   : > { %1600 = vadd.xlane.f32.xlu0 %v1599_v23 }
 0x705   : > { %1603 = vadd.xlane.f32.xlu0 %v1602_v44 }
 0x70c   : > { %v1583_v46 = vpop.xlane.xlu1 %1582 }
 0x70d   : > { %3047 = vrcp.f32 %v1583_v46 }
 0x70e   : > { %v1586_v51 = vpop.xlane.xlu0 %1585 }
 0x70f   : > { %3049 = vrcp.f32 %v1586_v51  ;;  %v1562_v51 = vsub.f32 %v3874_v58, %v3923_v53 }
 0x710   : > { %v1346_v55 = vpop.permute.xlu1 %1345 }
 0x711   : > { %2663 = vmatprep.subr.bf16.mxu1 %v1346_v55 }
 0x712   : > { %2664 = vmatpush3.bf16.msra.mxu1 %v1346_v55  ;;  %v1589_v57 = vpop.xlane.xlu0 %1588  ;;  %v1575_v55 = vmul.f32 1.442695, %v1562_v51 }
 0x713   : > { %3051 = vrcp.f32 %v1589_v57 }
 0x716   : > { %v1592_v25 = vpop.xlane.xlu0 %1591 }
 0x717   : > { %v3048_v59 = vpop.eup %3047  ;;  %3053 = vrcp.f32 %v1592_v25 }
 0x718   : > { %v4013_v28 = vmul.f32 %v3048_v59, %v3929_v30 }
 0x719   : > { %v3050_v16 = vpop.eup %3049 }
 0x71a   : > { %v4016_v13 = vmul.f32 %v3050_v16, %v3933_v14 }
 0x71b   : > { %1722 = vrot.lane.b32.xlu0 %v3629_v21, %s3304_s18 }
 0x71c   : > { %v1621_v12 = vpack.c.bf16 %v4016_v13, %v4013_v28 }
 0x71d   : > { %v3052_v24 = vpop.eup %3051 }
 0x71e   : > { %v4025_v50 = vmul.f32 %v3052_v24, %v3937_v22 }
 0x71f   : > { %1714 = vrot.lane.b32.xlu0 %v3627_v19, %s3304_s18 }
 0x721   : > { %v3054_v26 = vpop.eup %3053 }
 0x722   : > { %v4028_v30 = vmul.f32 %v3054_v26, %v3941_v31 }
 0x723   : > { %1718 = vrot.lane.b32.xlu0 %v3666_v61, %s3304_s18 }
 0x724   : > { %v1622_v21 = vpack.c.bf16 %v4028_v30, %v4025_v50 }
 0x741   : > { %v1266_v14 = vpop.xlane.xlu1 %1265 }
 0x742   : > { %v1274_v32 = vsub.f32 %v3949_v39, %v1266_v14 }
 0x744   : > { %v1289_v60 = vmul.f32 1.442695, %v1274_v32 }
 0x745   : > { %v1260_v8 = vpop.xlane.xlu1 %1259 }
 0x746   : > { %3055 = vpow2.f32 %v1289_v60  ;;  %v1272_v19 = vsub.f32 %v3953_v37, %v1260_v8 }
 0x748   : > { %v1285_v18 = vmul.f32 1.442695, %v1272_v19 }
 0x749   : > { %v1628_v37 = vpop.permute.xlu1 %1627 }
 0x74a   : > { %3057 = vpow2.f32 %v1285_v18 }
 0x74b   : > { %3059 = vpow2.f32 %v1575_v55 }
 0x74d   : > { %v1299_v22 = vpop.xlane.xlu0 %1298  ;;  %v1630_v57 = vpop.permute.xlu1 %1629 }
 0x750   : > { %v4036_v23 = vpop.eup %3055 }
 0x751   : > { %v1293_v31 = vpop.xlane.xlu0 %1292  ;;  %v1312_v61 = vsel %vm960_vm5, %v4036_v23, 0.0 }
 0x752   : > { %1313 = vadd.xlane.f32.xlu1 %v1312_v61 }
 0x754   : > { %v4040_v44 = vpop.eup %3057 }
 0x755   : > { %v1626_v46 = vpop.permute.xlu0 %1625  ;;  %v1306_v39 = vsel %vm960_vm5, %v4040_v44, 0.0  ;;  %v4048_v16 = vpop.eup %3059 }
 0x756   : > { %1307 = vadd.xlane.f32.xlu1 %v1306_v39  ;;  %2689 = vmatprep.subr.bf16.mxu1 %v1626_v46  ;;  %v1596_v26 = vsel %vm960_vm5, %v4048_v16, 0.0 }
 0x767   : > { %1631 = vrot.lane.b32.xlu1 %v3656_v54, %s3303_s16 }
 0x77e   : > { %v1302_v25 = vpop.xlane.xlu1 %1301 }
 0x77f   : > { %3061 = vrcp.f32 %v1302_v25 }
 0x780   : > { %3063 = vrcp.f32 %v1293_v31 }
 0x781   : > { %3065 = vrcp.f32 %v1299_v22 }
 0x782   : > { %v1296_v59 = vpop.xlane.xlu1 %1295 }
 0x783   : > { %3067 = vrcp.f32 %v1296_v59 }
 0x789   : > { %v3062_v24 = vpop.eup %3061 }
 0x78a   : > { %v3064_v14 = vpop.eup %3063  ;;  %v1326_v58 = vmul.f32 %v3062_v24, %v3982_v49  ;;  %v1311_v49 = vpop.xlane.xlu1 %1310 }
 0x78b   : > { %1597 = vadd.xlane.f32.xlu1 %v1596_v26  ;;  %v3066_v32 = vpop.eup %3065  ;;  %v1323_v53 = vmul.f32 %v3064_v14, %v3964_v38 }
 0x78c   : > { %v1325_v19 = vmul.f32 %v3066_v32, %v3960_v27  ;;  %v1305_v27 = vpop.xlane.xlu0 %1304 }
 0x78d   : > { %v3068_v60 = vpop.eup %3067 }
 0x78e   : > { %v1324_v8 = vmul.f32 %v3068_v60, %v3988_v17  ;;  %v1332_v22 = vpack.c.bf16 %v1326_v58, %v1325_v19 }
 0x790   : > { %v1331_v18 = vpack.c.bf16 %v1324_v8, %v1323_v53  ;;  %v1595_v38 = vpop.xlane.xlu0 %1594 }
 0x792   : > { %2665 = vmatprep.mubr.msk.bf16.mxu1 %vm960_vm5, %v1331_v18 }
 0x793   : > { %2666 = vmatmul.mubr.msk.bf16.vlgmr.msra.gmra.mrb[24].mxu1 %vm960_vm5, %v1332_v22 }
 0x794   : > { %2690 = vmatpush3.bf16.msra.mxu1 %v1626_v46  ;;  %v1601_v17 = vpop.xlane.xlu0 %1600 }
 0x795   : > { %2691 = vmatprep.subr.bf16.mxu1 %v1628_v37 }
 0x798   : > { %2692 = vmatpush3.bf16.msra.mxu1 %v1628_v37 }
 0x799   : > { %2693 = vmatprep.subr.bf16.mxu1 %v1630_v57 }
 0x79c   : > { %2694 = vmatpush3.bf16.msra.mxu1 %v1630_v57  ;;  %1724 = vrot.lane.b32.xlu1 %v3649_v47, %s3304_s18  ;;  %v1604_v47 = vpop.xlane.xlu0 %1603 }
 0x7a0   : > { %1726 = vrot.lane.b32.xlu1 %v3669_v62, %s3304_s18 }
 0x7a4   : > { %1728 = vrot.lane.b32.xlu1 %v3683_v10, %s3304_s18  ;;  %v1723_v10 = vpop.permute.xlu0 %1722 }
 0x7a5   : > { %v1743_v24 = vsel %vm870_vm0, %v1723_v10, 0 }
 0x7a8   : > { %1716 = vrot.lane.b32.xlu1 %v3646_v45, %s3304_s18  ;;  %v1715_v8 = vpop.permute.xlu0 %1714 }
 0x7ac   : > { %1720 = vrot.lane.b32.xlu1 %v3681_v9, %s3304_s18 }
 0x7df   : > { %v1314_v31 = vpop.xlane.xlu1 %1313 }
 0x7e0   : > { %3069 = vrcp.f32 %v1314_v31 }
 0x7e1   : > { %3071 = vrcp.f32 %v1305_v27 }
 0x7e2   : > { %3073 = vrcp.f32 %v1311_v49 }
 0x7e3   : > { %v1308_v61 = vpop.xlane.xlu1 %1307 }
 0x7e4   : > { %3075 = vrcp.f32 %v1308_v61 }
 0x7e5   : > { %3077 = vrcp.f32 %v1604_v47 }
 0x7e6   : > { %3079 = vrcp.f32 %v1595_v38 }
 0x7e7   : > { %v1632_v62 = vpop.permute.xlu1 %1631  ;;  %3081 = vrcp.f32 %v1601_v17 }
 0x7e8   : > { %2695 = vmatprep.subr.bf16.mxu1 %v1632_v62 }
 0x7e9   : > { %2696 = vmatpush3.bf16.msra.mxu1 %v1632_v62 }
 0x7ea   : > { %2773 = vmatprep.subr.msk.bf16.mxu1 %vm870_vm0, %v1723_v10  ;;  %v3070_v45 = vpop.eup %3069 }
 0x7eb   : > { %v3072_v46 = vpop.eup %3071  ;;  %v1330_v37 = vmul.f32 %v3070_v45, %v4036_v23 }
 0x7ec   : > { %v3074_v9 = vpop.eup %3073  ;;  %v1327_v51 = vmul.f32 %v3072_v46, %v3994_v1 }
 0x7ed   : > { %v1329_v57 = vmul.f32 %v3074_v9, %v3990_v0 }
 0x7ee   : > { %v3076_v39 = vpop.eup %3075 }
 0x7ef   : > { %v1328_v55 = vmul.f32 %v3076_v39, %v4040_v44  ;;  %v1334_v59 = vpack.c.bf16 %v1330_v37, %v1329_v57  ;;  %v3078_v28 = vpop.eup %3077 }
 0x7f1   : > { %v1333_v25 = vpack.c.bf16 %v1328_v55, %v1327_v51 }
 0x7f3   : > { %2669 = vmatprep.mubr.msk.bf16.mxu1 %vm960_vm5, %v1333_v25 }
 0x7f4   : > { %2670 = vmatmul.mubr.msk.bf16.gmra.mrb[28].mxu1 %vm960_vm5, %v1334_v59 }
 0x7f5   : > { %2697 = vmatprep.mubr.msk.bf16.mxu1 %vm960_vm5, %v1621_v12  ;;  %v3080_v12 = vpop.eup %3079 }
 0x7f6   : > { %v3082_v50 = vpop.eup %3081  ;;  %v1617_v44 = vmul.f32 %v3080_v12, %v4000_v42 }
 0x7f7   : > { %v1619_v32 = vmul.f32 %v3082_v50, %v4004_v33 }
 0x7fc   : > { %2698 = vmatmul.mubr.msk.bf16.vlgmr.msra.gmra.mrb[32].mxu1 %vm960_vm5, %v1622_v21  ;;  %v1620_v21 = vmul.f32 %v3078_v28, %v4008_v35 }
 0x7fd   : > { %2706 = vmatpush3.bf16.xpose.msra.mxu1 %v1743_v24 }
 0x7fe   : > { %v1624_v53 = vpack.c.bf16 %v1620_v21, %v1619_v32 }
 0x818   : > { %v1598_v0 = vpop.xlane.xlu1 %1597 }
 0x819   : > { %3083 = vrcp.f32 %v1598_v0 }
 0x81c   : > { %v1725_v1 = vpop.permute.xlu1 %1724 }
 0x81d   : > { %v1746_v23 = vsel %vm870_vm0, %v1725_v1, 0  ;;  %2774 = vmatprep.subr.msk.bf16.mxu1 %vm870_vm0, %v1725_v1 }
 0x81e   : > { %2708 = vmatpush3.bf16.xpose.msra.mxu1 %v1746_v23 }
 0x820   : > { %v1727_v13 = vpop.permute.xlu1 %1726 }
 0x821   : > { %2775 = vmatprep.subr.msk.bf16.mxu1 %vm870_vm0, %v1727_v13  ;;  %v1749_v14 = vsel %vm870_vm0, %v1727_v13, 0 }
 0x823   : > { %v3084_v30 = vpop.eup %3083 }
 0x824   : > { %v1618_v26 = vmul.f32 %v3084_v30, %v4048_v16  ;;  %v1729_v60 = vpop.permute.xlu1 %1728  ;;  %v1719_v16 = vpop.permute.xlu0 %1718 }
 0x825   : > { %v1752_v42 = vsel %vm870_vm0, %v1729_v60, 0 }
 0x826   : > { %2710 = vmatpush3.bf16.xpose.msra.mxu1 %v1749_v14  ;;  %v1623_v58 = vpack.c.bf16 %v1618_v26, %v1617_v44 }
 0x827   : > { %2776 = vmatprep.subr.msk.bf16.mxu1 %vm870_vm0, %v1729_v60 }
 0x828   : > { %2701 = vmatprep.mubr.msk.bf16.mxu1 %vm960_vm5, %v1623_v58  ;;  %v1717_v35 = vpop.permute.xlu1 %1716 }
 0x829   : > { %2702 = vmatmul.mubr.msk.bf16.gmra.mrb[36].mxu1 %vm960_vm5, %v1624_v53 }
 0x82a   : > { %2713 = vmatprep.mubr.msk.bf16.mxu1 %vm870_vm0, %v1715_v8 }
 0x82c   : > { %v1721_v33 = vpop.permute.xlu1 %1720 }
 0x82e   : > { %2712 = vmatpush3.bf16.xpose.msra.mxu1 %v1752_v42 }
 0x835   : > { %2714 = vmatmul.mubr.msk.bf16.vlgmr.msra.gmra.mrb[40].mxu1 %vm870_vm0, %v1717_v35 }
 0x836   : > { %2717 = vmatprep.mubr.msk.bf16.mxu1 %vm870_vm0, %v1719_v16 }
 0x83d   : > { %2718 = vmatmul.mubr.msk.bf16.gmra.mrb[44].mxu1 %vm870_vm0, %v1721_v33 }
 0x866   : > { %v4100_v19 = vpop.f32.mrb[24].mxu1 }
 0x867   : > { %v4102_v18 = vpop.f32.mrb[25].mxu1 }
 0x868   : > { %v4104_v22 = vpop.f32.mrb[26].mxu1 }
 0x869   : > { %v2878_v27 = vpack.i.bf16 %v4104_v22, %v4100_v19  ;;  %v4108_v38 = vpop.f32.mrb[27].mxu1 }
 0x86a   : > { %v2873_v49 = vpack.i.bf16 %v4108_v38, %v4102_v18 }
 0x8c7   : > { %v4112_v17 = vpop.f32.mrb[28].mxu1 }
 0x8c8   : > { %v4114_v31 = vpop.f32.mrb[29].mxu1 }
 0x8c9   : > { %v4116_v47 = vpop.f32.mrb[30].mxu1 }
 0x8ca   : > { %v2898_v61 = vpack.i.bf16 %v4116_v47, %v4112_v17  ;;  %v4120_v62 = vpop.f32.mrb[31].mxu1 }
 0x8cb   : > { %v2893_v10 = vpack.i.bf16 %v4120_v62, %v4114_v31 }
 0x8cf   : > { %v4124_v45 = vpop.f32.mrb[32].mxu1 }
 0x8d0   : > { %v4126_v46 = vpop.f32.mrb[33].mxu1 }
 0x8d1   : > { %v4128_v9 = vpop.f32.mrb[34].mxu1 }
 0x8d2   : > { %v2888_v39 = vpack.i.bf16 %v4128_v9, %v4124_v45  ;;  %v4132_v37 = vpop.f32.mrb[35].mxu1 }
 0x8d3   : > { %v2883_v51 = vpack.i.bf16 %v4132_v37, %v4126_v46 }
 0x8fc   : > { %v4136_v55 = vpop.f32.mrb[36].mxu1 }
 0x8fd   : > { %v4138_v57 = vpop.f32.mrb[37].mxu1 }
 0x8fe   : > { %v4140_v25 = vpop.f32.mrb[38].mxu1 }
 0x8ff   : > { %v2918_v59 = vpack.i.bf16 %v4140_v25, %v4136_v55  ;;  %v4144_v24 = vpop.f32.mrb[39].mxu1 }
 0x900   : > { %v2913_v0 = vpack.i.bf16 %v4144_v24, %v4138_v57 }
 0x908   : > { %v2715_v1 = vpop.f32.mrb[40].mxu1 }
 0x909   : > { %v1788_v23 = vpop.f32.mrb[41].mxu1  ;;  %v1797_v50 = vadd.f32 %v2715_v1, %v3705_v40 }
 0x90a   : > { %v1789_v28 = vadd.f32 %v1788_v23, %v3700_v15  ;;  %v2716_v13 = vpop.f32.mrb[42].mxu1 }
 0x90b   : > { %v1791_v12 = vpop.f32.mrb[43].mxu1  ;;  %v1800_v26 = vadd.f32 %v2716_v13, %v3702_v20  ;;  %v1825_v32 = vsel %vm960_vm5, %v1797_v50, -inf }
 0x90c   : > { %v1792_v30 = vadd.f32 %v1791_v12, %v3709_v29  ;;  %v1819_v21 = vsel %vm960_vm5, %v1789_v28, -inf }
 0x90d   : > { %1820 = vmax.xlane.f32.xlu0 %v1819_v21  ;;  %v1828_v29 = vsel %vm960_vm5, %v1800_v26, -inf }
 0x90e   : > { %v1822_v44 = vsel %vm960_vm5, %v1792_v30, -inf }
 0x90f   : > { %1823 = vmax.xlane.f32.xlu1 %v1822_v44 }
 0x910   : > { %v2719_v14 = vpop.f32.mrb[44].mxu1 }
 0x911   : > { %1826 = vmax.xlane.f32.xlu0 %v1825_v32  ;;  %v1804_v60 = vpop.f32.mrb[45].mxu1  ;;  %v1813_v42 = vadd.f32 %v2719_v14, %v3723_v48 }
 0x912   : > { %v2720_v15 = vpop.f32.mrb[46].mxu1  ;;  %v1805_v53 = vadd.f32 %v1804_v60, %v3718_v43 }
 0x913   : > { %v1807_v58 = vpop.f32.mrb[47].mxu1  ;;  %v1816_v8 = vadd.f32 %v2720_v15, %v3721_v2  ;;  %v1837_v43 = vsel %vm960_vm5, %v1813_v42, -inf }
 0x914   : > { %v4157_v40 = vadd.f32 %v1807_v58, %v3727_v52  ;;  %v1831_v35 = vsel %vm960_vm5, %v1805_v53, -inf }
 0x915   : > { %1829 = vmax.xlane.f32.xlu0 %v1828_v29  ;;  %v1840_v16 = vsel %vm960_vm5, %v1816_v8, -inf }
 0x916   : > { %v1834_v20 = vsel %vm960_vm5, %v4157_v40, -inf }
 0x917   : > { %1835 = vmax.xlane.f32.xlu1 %v1834_v20 }
 0x919   : > { %1832 = vmax.xlane.f32.xlu0 %v1831_v35 }
 0x91b   : > { %1841 = vmax.xlane.f32.xlu1 %v1840_v16 }
 0x91d   : > { %1838 = vmax.xlane.f32.xlu0 %v1837_v43 }
 0x99a   : > { %v1821_v52 = vpop.xlane.xlu0 %1820 }
 0x99b   : > { %v1843_v33 = vsub.f32 %v1789_v28, %v1821_v52 }
 0x99c   : > { %v1824_v1 = vpop.xlane.xlu1 %1823 }
 0x99d   : > { %v1851_v13 = vmul.f32 1.442695, %v1843_v33  ;;  %v1844_v12 = vsub.f32 %v1792_v30, %v1824_v1 }
 0x99e   : > { %v1827_v23 = vpop.xlane.xlu0 %1826 }
 0x99f   : > { %v1845_v2 = vsub.f32 %v1797_v50, %v1827_v23  ;;  %v1853_v14 = vmul.f32 1.442695, %v1844_v12 }
 0x9a1   : > { %v1855_v21 = vmul.f32 1.442695, %v1845_v2 }
 0x9a2   : > { %v1830_v44 = vpop.xlane.xlu0 %1829 }
 0x9a3   : > { %3085 = vpow2.f32 %v1855_v21  ;;  %v1846_v48 = vsub.f32 %v1800_v26, %v1830_v44 }
 0x9a4   : > { %3087 = vpow2.f32 %v1851_v13  ;;  %v1836_v2 = vpop.xlane.xlu1 %1835 }
 0x9a5   : > { %v1857_v32 = vmul.f32 1.442695, %v1846_v48 }
 0x9a6   : > { %v1833_v60 = vpop.xlane.xlu0 %1832 }
 0x9a7   : > { %3089 = vpow2.f32 %v1857_v32  ;;  %v1847_v15 = vsub.f32 %v1805_v53, %v1833_v60 }
 0x9a8   : > { %3091 = vpow2.f32 %v1853_v14  ;;  %v1842_v13 = vpop.xlane.xlu1 %1841 }
 0x9a9   : > { %v1859_v28 = vmul.f32 1.442695, %v1847_v15  ;;  %v1850_v12 = vsub.f32 %v1816_v8, %v1842_v13 }
 0x9aa   : > { %v1839_v58 = vpop.xlane.xlu0 %1838 }
 0x9ab   : > { %v1849_v29 = vsub.f32 %v1813_v42, %v1839_v58  ;;  %v1865_v21 = vmul.f32 1.442695, %v1850_v12 }
 0x9ad   : > { %v4167_v20 = vpop.eup %3085  ;;  %v1863_v35 = vmul.f32 1.442695, %v1849_v29 }
 0x9ae   : > { %v1873_v50 = vsel %vm960_vm5, %v4167_v20, 0.0  ;;  %v3088_v30 = vpop.eup %3087 }
 0x9af   : > { %3093 = vpow2.f32 %v1863_v35  ;;  %1874 = vadd.xlane.f32.xlu0 %v1873_v50  ;;  %v1867_v16 = vsel %vm960_vm5, %v3088_v30, 0.0 }
 0x9b0   : > { %3095 = vpow2.f32 %v1859_v28 }
 0x9b1   : > { %v4171_v26 = vpop.eup %3089  ;;  %3097 = vpow2.f32 %v1865_v21 }
 0x9b2   : > { %v1876_v53 = vsel %vm960_vm5, %v4171_v26, 0.0  ;;  %v3092_v43 = vpop.eup %3091 }
 0x9b3   : > { %1868 = vadd.xlane.f32.xlu0 %v1867_v16  ;;  %1877 = vadd.xlane.f32.xlu1 %v1876_v53  ;;  %v1870_v42 = vsel %vm960_vm5, %v3092_v43, 0.0  ;;  %v2966_v53 = vld [vmem:[#allocation8 + $0x8] sm:$0xff]  }
 0x9b7   : > { %1871 = vadd.xlane.f32.xlu1 %v1870_v42  ;;  %v2968_v42 = vld [vmem:[#allocation8 + $0x18] sm:$0xff]  }
 0x9b9   : > { %v4177_v52 = vpop.eup %3093 }
 0x9ba   : > { %v1885_v33 = vsel %vm960_vm5, %v4177_v52, 0.0  ;;  %v4181_v1 = vpop.eup %3095 }
 0x9bb   : > { %1886 = vadd.xlane.f32.xlu0 %v1885_v33  ;;  %v1879_v23 = vsel %vm960_vm5, %v4181_v1, 0.0  ;;  %v2969_v33 = vld [vmem:[#allocation8 + $0x20] sm:$0xff]  }
 0x9bf   : > { %1880 = vadd.xlane.f32.xlu0 %v1879_v23  ;;  %v2972_v23 = vld [vmem:[#allocation8 + $0x38] sm:$0xff]  }
 0x9c8   : > { %1913 = vrot.lane.b32.xlu1 %v3637_v34, %s3304_s18  ;;  %v1848_v34 = vsub.f32 %v4157_v40, %v1836_v2 }
 0x9cc   : > { %1915 = vrot.lane.b32.xlu1 %v3659_v56, %s3304_s18  ;;  %v3098_v56 = vpop.eup %3097 }
 0x9cd   : > { %v1888_v18 = vsel %vm960_vm5, %v3098_v56, 0.0 }
 0x9d5   : > { %1911 = vrot.lane.b32.xlu0 %v3639_v36, %s3304_s18  ;;  %v1861_v36 = vmul.f32 1.442695, %v1848_v34 }
 0x9d7   : > { %3099 = vpow2.f32 %v1861_v36 }
 0x9d9   : > { %2874 = vrot.lane.b32.xlu0 %v2873_v49, %s3304_s18 }
 0x9dd   : > { %2884 = vrot.lane.b32.xlu0 %v2883_v51, %s3303_s16 }
 0x9e1   : > { %2894 = vrot.lane.b32.xlu0 %v2893_v10, %s3304_s18  ;;  %v3100_v38 = vpop.eup %3099 }
 0x9e2   : > { %v1882_v49 = vsel %vm960_vm5, %v3100_v38, 0.0 }
 0x9f0   : > { %1889 = vadd.xlane.f32.xlu1 %v1888_v18 }
 0x9f4   : > { %1883 = vadd.xlane.f32.xlu1 %v1882_v49 }
 0xa05   : > { %1917 = vrot.lane.b32.xlu1 %v3656_v54, %s3304_s18 }
 0xa09   : > { %2879 = vrot.lane.b32.xlu1 %v2878_v27, %s3304_s18 }
 0xa0d   : > { %2889 = vrot.lane.b32.xlu1 %v2888_v39, %s3303_s16 }
 0xa11   : > { %2899 = vrot.lane.b32.xlu1 %v2898_v61, %s3304_s18 }
 0xa3c   : > { %v1875_v31 = vpop.xlane.xlu0 %1874 }
 0xa40   : > { %v1878_v62 = vpop.xlane.xlu1 %1877  ;;  %v1869_v10 = vpop.xlane.xlu0 %1868 }
 0xa41   : > { %3101 = vrcp.f32 %v1869_v10 }
 0xa44   : > { %v1872_v54 = vpop.xlane.xlu1 %1871 }
 0xa45   : > { %3103 = vrcp.f32 %v1872_v54 }
 0xa46   : > { %3105 = vrcp.f32 %v1878_v62 }
 0xa47   : > { %3107 = vrcp.f32 %v1875_v31 }
 0xa48   : > { %v1887_v46 = vpop.xlane.xlu0 %1886  ;;  %v1914_v27 = vpop.permute.xlu1 %1913 }
 0xa4b   : > { %v3102_v19 = vpop.eup %3101 }
 0xa4c   : > { %v1881_v37 = vpop.xlane.xlu0 %1880  ;;  %v1899_v40 = vmul.f32 %v3102_v19, %v3088_v30  ;;  %v1916_v17 = vpop.permute.xlu1 %1915 }
 0xa4f   : > { %v3104_v22 = vpop.eup %3103 }
 0xa50   : > { %v1912_v51 = vpop.permute.xlu0 %1911  ;;  %v1900_v45 = vmul.f32 %v3104_v22, %v3092_v43  ;;  %v3106_v61 = vpop.eup %3105  ;;  %v2967_v43 = vld [vmem:[#allocation8 + $0x10] sm:$0xff]  }
 0xa51   : > { %2721 = vmatprep.subr.bf16.mxu0 %v1912_v51  ;;  %v3108_v8 = vpop.eup %3107  ;;  %v1902_v44 = vmul.f32 %v3106_v61, %v4171_v26 }
 0xa52   : > { %2722 = vmatpush3.bf16.msra.mxu0 %v1912_v51  ;;  %v1907_v9 = vpack.c.bf16 %v1900_v45, %v1899_v40  ;;  %v1901_v14 = vmul.f32 %v3108_v8, %v4167_v20  ;;  %v2965_v20 = vld [vmem:[#allocation8] sm:$0xff]  }
 0xa53   : > { %2723 = vmatprep.subr.bf16.mxu0 %v1914_v27 }
 0xa54   : > { %2729 = vmatprep.mubr.msk.bf16.mxu0 %vm960_vm5, %v1907_v9  ;;  %v1908_v32 = vpack.c.bf16 %v1902_v44, %v1901_v14  ;;  %v2875_v54 = vpop.permute.xlu0 %2874 }
 0xa55   : > { %v2876_v55 = vunpack.i.l.bf16 %v2875_v54  ;;  %v2877_v25 = vunpack.i.h.bf16 %v2875_v54 }
 0xa56   : > { %2724 = vmatpush3.bf16.msra.mxu0 %v1914_v27 }
 0xa57   : > { %2725 = vmatprep.subr.bf16.mxu0 %v1916_v17  ;;  %v2096_v51 = vsel %vm870_vm0, %v3838_v3, %v2876_v55  ;;  %v2097_v45 = vsel %vm870_vm0, %v3842_v6, %v2877_v25  ;;  %v2262_v25 = vld [vmem:[%s3542_s10] sm:$0xff] }
 0xa5a   : > { %2726 = vmatpush3.bf16.msra.mxu0 %v1916_v17 }
 0xa7d   : > { %v1890_v47 = vpop.xlane.xlu1 %1889 }
 0xa7e   : > { %3109 = vrcp.f32 %v1890_v47 }
 0xa7f   : > { %3111 = vrcp.f32 %v1881_v37  ;;  %v2885_v37 = vpop.permute.xlu0 %2884 }
 0xa80   : > { %3113 = vrcp.f32 %v1887_v46  ;;  %v2887_v40 = vunpack.i.h.bf16 %v2885_v37 }
 0xa81   : > { %v1884_v39 = vpop.xlane.xlu1 %1883 }
 0xa82   : > { %3115 = vrcp.f32 %v1884_v39  ;;  %v2105_v6 = vsel %vm960_vm5, %v2097_v45, %v2887_v40 }
 0xa83   : > { %v2895_v22 = vpop.permute.xlu0 %2894 }
 0xa85   : > { %v1918_v48 = vpop.permute.xlu1 %1917 }
 0xa86   : > { %2727 = vmatprep.subr.bf16.mxu0 %v1918_v48 }
 0xa87   : > { %2728 = vmatpush3.bf16.msra.mxu0 %v1918_v48 }
 0xa88   : > { %v3110_v60 = vpop.eup %3109  ;;  %2737 = vmatprep.subr.bf16.mxu0 %v2965_v20 }
 0xa89   : > { %v3112_v15 = vpop.eup %3111  ;;  %v1906_v28 = vmul.f32 %v3110_v60, %v3098_v56  ;;  %v2880_v10 = vpop.permute.xlu1 %2879  ;;  %v2897_v60 = vunpack.i.h.bf16 %v2895_v22 }
 0xa8a   : > { %2730 = vmatmul.mubr.msk.bf16.vlgmr.msra.gmra.mrb[32].mxu0 %vm960_vm5, %v1908_v32  ;;  %v3114_v58 = vpop.eup %3113  ;;  %v1903_v35 = vmul.f32 %v3112_v15, %v4181_v1  ;;  %v2971_v1 = vld [vmem:[#allocation8 + $0x30] sm:$0xff]   ;;  %v2882_v27 = vunpack.i.h.bf16 %v2880_v10  ;;  %v2881_v57 = vunpack.i.l.bf16 %v2880_v10  ;;  %v2481_v10 = vld [vmem:[%s4346_s6] ss:$0 sm:$0xff] }
 0xa8b   : > { %v1905_v30 = vmul.f32 %v3114_v58, %v4177_v52  ;;  %2738 = vmatpush3.bf16.msra.mxu0 %v2965_v20  ;;  %v2970_v52 = vld [vmem:[#allocation8 + $0x28] sm:$0xff]  }
 0xa8c   : > { %v3116_v29 = vpop.eup %3115  ;;  %2739 = vmatprep.subr.bf16.mxu0 %v2966_v53  ;;  %v2099_v47 = vsel %vm870_vm0, %v3840_v4, %v2882_v27  ;;  %v2098_v61 = vsel %vm870_vm0, %v3836_v41, %v2881_v57  ;;  %v2896_v4 = vunpack.i.l.bf16 %v2895_v22  ;;  %v2265_v22 = vld [vmem:[%s3542_s10 + $0x18] sm:$0xff] }
 0xa8d   : > { %v1904_v50 = vmul.f32 %v3116_v29, %v3100_v38  ;;  %v1910_v26 = vpack.c.bf16 %v1906_v28, %v1905_v30  ;;  %v2890_v46 = vpop.permute.xlu1 %2889 }
 0xa8e   : > { %v2892_v24 = vunpack.i.h.bf16 %v2890_v46 }
 0xa8f   : > { %v1909_v16 = vpack.c.bf16 %v1904_v50, %v1903_v35  ;;  %2740 = vmatpush3.bf16.msra.mxu0 %v2966_v53 }
 0xa90   : > { %2741 = vmatprep.subr.bf16.mxu0 %v2967_v43  ;;  %v2107_v3 = vsel %vm960_vm5, %v2099_v47, %v2892_v24  ;;  %v2268_v47 = vld [vmem:[%s3542_s10 + $0x30] sm:$0xff] }
 0xa91   : > { %2733 = vmatprep.mubr.msk.bf16.mxu0 %vm960_vm5, %v1909_v16  ;;  %v2900_v19 = vpop.permute.xlu1 %2899 }
 0xa92   : > { %2734 = vmatmul.mubr.msk.bf16.gmra.mrb[36].mxu0 %vm960_vm5, %v1910_v26  ;;  %v2902_v50 = vunpack.i.h.bf16 %v2900_v19  ;;  %v2901_v30 = vunpack.i.l.bf16 %v2900_v19 }
 0xa93   : > { %2742 = vmatpush3.bf16.msra.mxu0 %v2967_v43 }
 0xa94   : > { %2743 = vmatprep.subr.bf16.mxu0 %v2968_v42 }
 0xa97   : > { %2744 = vmatpush3.bf16.msra.mxu0 %v2968_v42 }
 0xa98   : > { %2745 = vmatprep.subr.bf16.mxu0 %v2969_v33 }
 0xa9b   : > { %2746 = vmatpush3.bf16.msra.mxu0 %v2969_v33  ;;  %v2101_v33 = vsel %vm870_vm0, %v3850_v5, %v2897_v60  ;;  %v2267_v60 = vld [vmem:[%s3542_s10 + $0x28] sm:$0xff] }
 0xa9c   : > { %2747 = vmatprep.subr.bf16.mxu0 %v2970_v52 }
 0xa9f   : > { %2748 = vmatpush3.bf16.msra.mxu0 %v2970_v52  ;;  %v2100_v52 = vsel %vm870_vm0, %v3846_v63, %v2896_v4 }
 0xaa0   : > { %2749 = vmatprep.subr.bf16.mxu0 %v2971_v1 }
 0xaa3   : > { %2750 = vmatpush3.bf16.msra.mxu0 %v2971_v1 }
 0xaa4   : > { %2751 = vmatprep.subr.bf16.mxu0 %v2972_v23 }
 0xaa7   : > { %2752 = vmatpush3.bf16.msra.mxu0 %v2972_v23  ;;  %v2103_v23 = vsel %vm870_vm0, %v3848_v11, %v2902_v50 }
 0xb5d   : > { %v2731_v2 = vpop.f32.mrb[32].mxu0 }
 0xb5e   : > { %v1969_v13 = vpop.f32.mrb[33].mxu0 }
 0xb5f   : > { %v2732_v12 = vpop.f32.mrb[34].mxu0 }
 0xb60   : > { %v2903_v34 = vpack.i.bf16 %v2732_v12, %v2731_v2  ;;  %v1972_v21 = vpop.f32.mrb[35].mxu0  ;;  %v2102_v2 = vsel %vm870_vm0, %v3844_v7, %v2901_v30 }
 0xb61   : > { %v2908_v36 = vpack.i.bf16 %v1972_v21, %v1969_v13 }
 0xb62   : > { %2904 = vrot.lane.b32.xlu1 %v2903_v34, %s3302_s19 }
 0xb63   : > { %2909 = vrot.lane.b32.xlu0 %v2908_v36, %s3302_s19 }
 0xb65   : > { %v2735_v56 = vpop.f32.mrb[36].mxu0 }
 0xb66   : > { %2919 = vrot.lane.b32.xlu1 %v2918_v59, %s3303_s16  ;;  %v1985_v18 = vpop.f32.mrb[37].mxu0  ;;  %v2886_v59 = vunpack.i.l.bf16 %v2885_v37 }
 0xb67   : > { %2914 = vrot.lane.b32.xlu0 %v2913_v0, %s3303_s16  ;;  %v2736_v38 = vpop.f32.mrb[38].mxu0  ;;  %v2891_v0 = vunpack.i.l.bf16 %v2890_v46  ;;  %v2264_v46 = vld [vmem:[%s3542_s10 + $0x10] sm:$0xff] }
 0xb68   : > { %v2928_v49 = vpack.i.bf16 %v2736_v38, %v2735_v56  ;;  %v1988_v31 = vpop.f32.mrb[39].mxu0  ;;  %v2104_v9 = vsel %vm960_vm5, %v2096_v51, %v2886_v59 }
 0xb69   : > { %v2923_v62 = vpack.i.bf16 %v1988_v31, %v1985_v18  ;;  %v2106_v48 = vsel %vm960_vm5, %v2098_v61, %v2891_v0  ;;  %v2263_v0 = vld [vmem:[%s3542_s10 + $0x8] sm:$0xff] }
 0xb6a   : > { %2929 = vrot.lane.b32.xlu1 %v2928_v49, %s3302_s19 }
 0xb6b   : > { %2924 = vrot.lane.b32.xlu0 %v2923_v62, %s3302_s19  ;;  %s3209_s19 = scalar_lea.vmem %s3208_s17, 2048 }
 0xbd4   : > { %v2905_v17 = vpop.permute.xlu1 %2904 }
 0xbd5   : > { %v2907_v39 = vunpack.i.h.bf16 %v2905_v17  ;;  %v2906_v8 = vunpack.i.l.bf16 %v2905_v17  ;;  %v2910_v44 = vpop.permute.xlu0 %2909 }
 0xbd6   : > { %v2912_v14 = vunpack.i.h.bf16 %v2910_v44  ;;  %v2911_v32 = vunpack.i.l.bf16 %v2910_v44 }
 0xbd7   : > { %v2116_v15 = vsel %vm2112_vm10, %v2107_v3, %v2907_v39  ;;  %v2115_v58 = vsel %vm2112_vm10, %v2106_v48, %v2906_v8  ;;  %v2266_v8 = vld [vmem:[%s3542_s10 + $0x20] sm:$0xff]  ;;  %v2269_v3 = vld [vmem:[%s3542_s10 + $0x38] sm:$0xff]  ;;  %s3203_s10 = scalar_lea.vmem %s4286_s9, 1024 }
 0xbd8   : > { %v2122_v29 = vpack.c.bf16 %v2116_v15, %v2115_v58  ;;  %v2920_v28 = vpop.permute.xlu1 %2919  ;;  %v2113_v41 = vsel %vm2112_vm10, %v2104_v9, %v2911_v32  ;;  %v2114_v35 = vsel %vm2112_vm10, %v2105_v6, %v2912_v14  ;;  %p3204_p8 = scmp.ne.s32.totalorder %s4286_s9, %s3203_s10  ;;  %p3211_p5 = scmp.lt.s32.totalorder %s3209_s19, %s3203_s10 }
 0xbd9   : > { %v2915_v16 = vpop.permute.xlu0 %2914  ;;  %v2121_v26 = vpack.c.bf16 %v2114_v35, %v2113_v41  ;;  %v2922_v20 = vunpack.i.h.bf16 %v2920_v28  ;;  %v2921_v53 = vunpack.i.l.bf16 %v2920_v28 }
 0xbda   : > { %v2917_v43 = vunpack.i.h.bf16 %v2915_v16  ;;  %v2916_v42 = vunpack.i.l.bf16 %v2915_v16  ;;  %p3205_p1 = pnand %p3204_p8, %p4366_p12  ;;  %p3212_p9 = por %p3211_p5, %p3210_p3 }
 0xbdb   : > { %2753 = vmatprep.mubr.bf16.mxu0 %v2121_v26  ;;  %v2111_v21 = vsel %vm960_vm5, %v2103_v23, %v2922_v20  ;;  %v2110_v36 = vsel %vm960_vm5, %v2102_v2, %v2921_v53 }
 0xbdc   : > { %v2930_v1 = vpop.permute.xlu1 %2929  ;;  %2754 = vmatmul.mubr.bf16.vlgmr.msra.gmra.mrb[40].mxu0 %v2122_v29  ;;  %v2108_v63 = vsel %vm960_vm5, %v2100_v52, %v2916_v42  ;;  %v2109_v18 = vsel %vm960_vm5, %v2101_v33, %v2917_v43  ;;  %p3206_p10 = pneg %p3205_p1 }
 0xbdd   : > { %v2932_v13 = vunpack.i.h.bf16 %v2930_v1  ;;  %v2931_v12 = vunpack.i.l.bf16 %v2930_v1  ;;  %v2925_v34 = vpop.permute.xlu0 %2924 }
 0xbde   : > { %v2927_v5 = vunpack.i.h.bf16 %v2925_v34  ;;  %v2926_v56 = vunpack.i.l.bf16 %v2925_v34  ;;  %p3213_p11 = pnand %p3212_p9, %p3206_p10 }
 0xbdf   : > { %v2119_v11 = vsel %vm2112_vm10, %v2110_v36, %v2931_v12  ;;  %v2120_v7 = vsel %vm2112_vm10, %v2111_v21, %v2932_v13 }
 0xbe0   : > { %v2117_v38 = vsel %vm2112_vm10, %v2108_v63, %v2926_v56  ;;  %v2118_v49 = vsel %vm2112_vm10, %v2109_v18, %v2927_v5  ;;  %v2124_v31 = vpack.c.bf16 %v2120_v7, %v2119_v11 }
 0xbe1   : > { %v2123_v62 = vpack.c.bf16 %v2118_v49, %v2117_v38 }
 0xbe3   : > { %2757 = vmatprep.mubr.bf16.mxu0 %v2123_v62 }
 0xbe4   : > { %2758 = vmatmul.mubr.bf16.gmra.mrb[44].mxu0 %v2124_v31 }
 0xcaf   : > { %v2755_v54 = vpop.f32.mrb[40].mxu0 }
 0xcb0   : > { %v2239_v37 = vadd.f32 %v2755_v54, %v2481_v10  ;;  %v2230_v55 = vpop.f32.mrb[41].mxu0 }
 0xcb1   : > { %v2231_v59 = vadd.f32 %v2481_v10, %v2230_v55  ;;  %v2756_v19 = vpop.f32.mrb[42].mxu0 }
 0xcb2   : > { %v2272_v27 = vadd.f32 %v2264_v46, %v2239_v37  ;;  %v2242_v57 = vadd.f32 %v2756_v19, %v2481_v10  ;;  %v2233_v24 = vpop.f32.mrb[43].mxu0 }
 0xcb3   : > { %v2270_v51 = vadd.f32 %v2262_v25, %v2231_v59  ;;  %v2234_v40 = vadd.f32 %v2481_v10, %v2233_v24 }
 0xcb4   : > { %2280 = vst [vmem:[%s339_s23 + $0x10] sm:$0xff] %v2272_v27  ;;  %v2273_v45 = vadd.f32 %v2265_v22, %v2242_v57 }
 0xcb5   : > { %2278 = vst [vmem:[%s339_s23] sm:$0xff] %v2270_v51  ;;  %v2271_v9 = vadd.f32 %v2263_v0, %v2234_v40 }
 0xcb6   : > { %2281 = vst [vmem:[%s339_s23 + $0x18] sm:$0xff] %v2273_v45 }
 0xcb7   : > { %2279 = vst [vmem:[%s339_s23 + $0x8] sm:$0xff] %v2271_v9  ;;  %v2759_v17 = vpop.f32.mrb[44].mxu0 }
 0xcb8   : > { %v2255_v61 = vadd.f32 %v2759_v17, %v2481_v10  ;;  %v2246_v39 = vpop.f32.mrb[45].mxu0 }
 0xcb9   : > { %v2247_v44 = vadd.f32 %v2481_v10, %v2246_v39  ;;  %v2760_v48 = vpop.f32.mrb[46].mxu0 }
 0xcba   : > { %v2276_v14 = vadd.f32 %v2268_v47, %v2255_v61  ;;  %v2258_v32 = vadd.f32 %v2760_v48, %v2481_v10  ;;  %v2249_v6 = vpop.f32.mrb[47].mxu0 }
 0xcbb   : > { %v2274_v15 = vadd.f32 %v2266_v8, %v2247_v44  ;;  %v2250_v58 = vadd.f32 %v2481_v10, %v2249_v6 }
 0xcbc   : > { %2284 = vst [vmem:[%s339_s23 + $0x30] sm:$0xff] %v2276_v14  ;;  %v2277_v4 = vadd.f32 %v2269_v3, %v2258_v32 }
 0xcbd   : > { %2282 = vst [vmem:[%s339_s23 + $0x20] sm:$0xff] %v2274_v15  ;;  %v2275_v29 = vadd.f32 %v2267_v60, %v2250_v58 }
 0xcbe   : > { %2285 = vst [vmem:[%s339_s23 + $0x38] sm:$0xff] %v2277_v4 }
 0xcbf   : > { %2283 = vst [vmem:[%s339_s23 + $0x28] sm:$0xff] %v2275_v29 }
 0xcc0   : > { %3216 = shalt.err (!%p3213_p11)
}
 0xcc1   : > { %s3217_s16 = scalar_lea.hbm %s4291_s24, 1024  ;;  %s3221_s30 = scalar_lea.hbm %s4347_s7, 2048 }
 0xcc2   : > { %p3218_p0 = scmp.ne.s32.totalorder %s4291_s24, %s3217_s16  ;;  %p3222_p6 = scmp.lt.u32.totalorder %s4291_s24, %s4347_s7 }
 0xcc3   : > { %p3223_p7 = scmp.lt.u32.totalorder %s3221_s30, %s3217_s16  ;;  %p3225_p8 = scmp.lt.u32.totalorder %s3217_s16, %s4291_s24 }
 0xcc4   : > { %p3219_p4 = pnand %p3218_p0, %p4366_p12 }
 0xcc5   : > { %p3224_p2 = por %p3223_p7, %p3222_p6 }
 0xcc6   : > { %p3220_p13 = pneg %p3219_p4 }
 0xcc7   : > { %p3226_p1 = por %p3225_p8, %p3224_p2 }
 0xcc9   : > { %p3227_p10 = pnand %p3226_p1, %p3220_p13 }
 0xccb   : > { %3230 = shalt.err (!%p3227_p10)
}
 0xccc   : > { %s3306_s15 = smov 128   ;;  %s3307_s13 = smov 8  }
 0xccd   : > { %2787 = dma.vmem_to_hbm [thread:$0]  (%p4366_p12), %s4286_s9, 1024, %s4291_s24, %s2287_s27, %s3306_s15, %s3306_s15, %s3307_s13  }
 0xcce PF: > { %s4367_s10 = sld [smem:[#allocation13_spill]]  ;;  %s4368_s12 = sld [smem:[#allocation14_spill]] }
 0xccf   : > { %p4370_p5 = scmp.ge.s32.totalorder %s3289_s29, 2 }
 0xcd4   : > { %s2317_s17 = sand.u32 1, %s4367_s10   ;;  %p4369_p3 = scmp.ne.s32.totalorder %s4368_s12, 0 }
 0xcd5   : > { %s2318_s19 = scalar_lea.sflag [#allocation5], %s2317_s17 }
 0xcd6   : > { %p2801_p9 = pnand %p4370_p5, %p4369_p3 }
 0xcd8   : > { %3264 = dma.done.wait (!%p2801_p9), %s2318_s19, 1024  }
 0xcd9   : > { %3266 = vsyncadd (!%p2801_p9), %s2318_s19, 4294966272  ;;  %s24_s29 = sadd.s32 1, %s3289_s29   ;;  %s4371_s24 = smov %s3273_s25 }
 0xcda   : > { %p21_p11 = scmp.ge.s32.totalorder %s24_s29, 4   ;;  %s4372_s25 = smov %s3277_s26 }
 0xcdb   : > { %s4373_s26 = smov %s3490_s8  ;;  %s4374_s27 = smov %s3285_s28 }
 0xcdc   : > { %s4375_s28 = smov %s4377_s20  ;;  %23 = sbr.rel (!%p21_p11) target bundleno = 7 (0x7), region = 107 }
 0xce3   :  { %2323 = vsyncpa [#allocation4], 1 }
 0xce4   :  { %2325 = vsyncpa [#allocation4 + $0x1], 1 }
 0xce5   :  { %2326 = vsyncpa [#allocation7], 1 }
 0xce6   :  { %2327 = vsyncpa [#allocation5], 1 }
 0xce7   :  { %2329 = vsyncpa [#allocation5 + $0x1], 1 }

</bundles_post_ra>
